<compile_context>
chip_gen: v6e
topology: v6e:2x2x1
jax: 0.10.0
libtpu: 0.0.40
codegen_flags: <defaults>
</compile_context>

<pallas_src>
import jax
import jax.numpy as jnp
from jax.experimental import pallas as pl
from jax.experimental.pallas import tpu as pltpu


# Logical / padded hidden sizes.
H1, H2 = 400, 300
H1P, H2P = 512, 384           # lane-aligned (multiples of 128)

_TB_MAX = 1024                # max batch-tile rows (bf16 intermediates fit easily)


# ----------------------------- Pallas kernel ------------------------------- #
def _critic_kernel(
    xu_ref,                           # fused [x|u] input tile, bf16
    w14_ref, b14_ref,                 # fused layer 1+4  (out lanes: [h1 | h2])
    w2_ref, b2_ref, w5_ref, b5_ref,   # layer 2 / layer 5
    w36_ref, b36_ref,                 # fused layer 3+6 (block-diagonal [768, 2])
    out_ref,
):
    # --- fused first layer of both heads: one wide K=(S+A), N=1024 matmul ---
    xu = xu_ref[...]                                              # [TB, S+A] bf16
    h = jnp.dot(xu, w14_ref[...], preferred_element_type=jnp.float32) + b14_ref[...]
    h = jnp.maximum(h, 0.0).astype(jnp.bfloat16)                  # [TB, 1024] bf16

    h1 = h[:, :H1P]                                               # lane-aligned slices
    h2 = h[:, H1P:]

    # --- second layers (different inputs -> two matmuls, f32 acc, bf16 out) -
    g1 = jnp.maximum(
        jnp.dot(h1, w2_ref[...], preferred_element_type=jnp.float32) + b2_ref[...],
        0.0).astype(jnp.bfloat16)                                 # [TB, H2P]
    g2 = jnp.maximum(
        jnp.dot(h2, w5_ref[...], preferred_element_type=jnp.float32) + b5_ref[...],
        0.0).astype(jnp.bfloat16)                                 # [TB, H2P]

    # --- fused final projection: block-diag [2*H2P, 2], no concat copy ------
    w36 = w36_ref[...]                                            # [768, 2] bf16
    out = (jnp.dot(g1, w36[:H2P, :], preferred_element_type=jnp.float32)
           + jnp.dot(g2, w36[H2P:, :], preferred_element_type=jnp.float32)
           + b36_ref[...])                                        # [TB, 2] f32
    out_ref[...] = out.astype(out_ref.dtype)                      # col 0 = q1, col 1 = q2


# ------------------------------ JAX wrapper -------------------------------- #
def _round_up(n, m):
    return ((n + m - 1) // m) * m


def _choose_tiles(B):
    """Pick (tile_rows, num_tiles): >=2 tiles once B>=128 (v7x megacore),
    tile chosen from cdiv(B, n_tiles) to bound padding waste, capped at _TB_MAX."""
    B = max(int(B), 1)
    if B < 128:
        return _round_up(B, 8), 1
    n_tiles = max(2, -(-B // _TB_MAX))          # cdiv
    tb = _round_up(-(-B // n_tiles), 8)
    return tb, n_tiles


@jax.jit
def critic_forward(x, u, packed):
    """Equivalent of Critic.forward(x, u) -> (q1, q2). `packed` from pack_critic_params."""
    B, S = x.shape
    A = u.shape[1]
    KIN = S + A

    TB, n_tiles = _choose_tiles(B)
    B_pad = TB * n_tiles

    # Fused pad + concat + cast: one bf16 input stream for the kernel.
    xu = jnp.concatenate([x.astype(jnp.float32), u.astype(jnp.float32)], axis=1)
    xu_p = jnp.pad(xu, ((0, B_pad - B), (0, 0))).astype(jnp.bfloat16)

    args = (
        xu_p,
        packed["w14"], packed["b14"],
        packed["w2"], packed["b2"], packed["w5"], packed["b5"],
        packed["w36"], packed["b36"],
    )

    grid = (n_tiles,)
    # Weights/biases: full-array blocks with constant index maps -> VMEM resident.
    full_spec = lambda a: pl.BlockSpec(a.shape, lambda i: (0, 0))
    in_specs = [pl.BlockSpec((TB, KIN), lambda i: (i, 0))] + [full_spec(a) for a in args[1:]]
    out_spec = pl.BlockSpec((TB, 2), lambda i: (i, 0))

    # Advisory cost estimate so XLA can overlap this small call with neighbours.
    flops = (2 * B_pad * KIN * (2 * H1P)            # fused layer 1+4
             + 2 * (2 * B_pad * H1P * H2P)          # layers 2 and 5
             + 2 * B_pad * (2 * H2P) * 2)           # fused layer 3+6
    bytes_accessed = int(sum(int(a.size) * a.dtype.itemsize for a in args)
                         + B_pad * 2 * 4)

    out = pl.pallas_call(
        _critic_kernel,
        out_shape=jax.ShapeDtypeStruct((B_pad, 2), jnp.float32),
        grid=grid,
        in_specs=in_specs,
        out_specs=out_spec,
        compiler_params=pltpu.CompilerParams(
            dimension_semantics=("parallel",),
            vmem_limit_bytes=48 * 1024 * 1024),
        cost_estimate=pl.CostEstimate(
            flops=int(flops), transcendentals=0, bytes_accessed=bytes_accessed),
    )(*args)

    q1 = out[:B, 0:1]
    q2 = out[:B, 1:2]
    return q1, q2


# --------------------------- deterministic init ----------------------------- #
def init_critic_params(key, state_dim, action_dim, init_w=0.003):
    """Mimics Critic.__init__ / init_weights shapes (logical, unpadded params).
    Kernel-friendly layout: W as [in, out], bias as [1, out]."""
    in_dim = state_dim + action_dim

    def fanin_uniform(k, out_f, in_f):
        # fanin_init(weight.size()) with fanin = size[0] = out_features
        v = 1.0 / jnp.sqrt(jnp.float32(out_f))
        return jax.random.uniform(k, (out_f, in_f), jnp.float32, -v, v)

    def small_uniform(k, out_f, in_f, w):
        return jax.random.uniform(k, (out_f, in_f), jnp.float32, -w, w)

    def bias_uniform(k, out_f, in_f):
        # PyTorch nn.Linear default bias init: U(-1/sqrt(in_f), 1/sqrt(in_f))
        bound = 1.0 / jnp.sqrt(jnp.float32(in_f))
        return jax.random.uniform(k, (out_f,), jnp.float32, -bound, bound)

    ks = jax.random.split(key, 12)
    layers = {
        "1": (400, in_dim, "fanin"),
        "2": (300, 400, "fanin"),
        "3": (1, 300, "small"),
        "4": (400, in_dim, "fanin"),
        "5": (300, 400, "fanin"),
        "6": (1, 300, "small"),
    }
    params = {}
    for i, (name, (out_f, in_f, mode)) in enumerate(layers.items()):
        kw, kb = ks[2 * i], ks[2 * i + 1]
        if mode == "fanin":
            w_pt = fanin_uniform(kw, out_f, in_f)     # PyTorch layout [out, in]
        else:
            w_pt = small_uniform(kw, out_f, in_f, init_w)
        b = bias_uniform(kb, out_f, in_f)
        params[f"w{name}"] = w_pt.T                   # [in, out]
        params[f"b{name}"] = b.reshape(1, out_f)      # [1, out]
    return params


def pack_critic_params(params, state_dim, weight_dtype=jnp.bfloat16):
    """One-time packing: fuse/pad/cast params into the kernel layout."""
    in_dim = params["w1"].shape[0]

    def pad_to(a, rows, cols):
        return jnp.pad(a, ((0, rows - a.shape[0]), (0, cols - a.shape[1])))

    # Fused layer 1+4 along output lanes: [:, :H1P] -> head1, [:, H1P:] -> head2.
    w14 = jnp.concatenate([pad_to(params["w1"], in_dim, H1P),
                           pad_to(params["w4"], in_dim, H1P)], axis=1)   # [in, 1024]
    b14 = jnp.concatenate([pad_to(params["b1"], 1, H1P),
                           pad_to(params["b4"], 1, H1P)], axis=1)        # [1, 1024]

    w2 = pad_to(params["w2"], H1P, H2P)
    b2 = pad_to(params["b2"], 1, H2P)
    w5 = pad_to(params["w5"], H1P, H2P)
    b5 = pad_to(params["b5"], 1, H2P)

    # Fused layer 3+6 as block-diagonal [2*H2P, 2]: column 0 = q1, column 1 = q2.
    w3p = pad_to(params["w3"], H2P, 1)
    w6p = pad_to(params["w6"], H2P, 1)
    zcol = jnp.zeros((H2P, 1), jnp.float32)
    w36 = jnp.concatenate([jnp.concatenate([w3p, zcol], axis=1),
                           jnp.concatenate([zcol, w6p], axis=1)], axis=0)  # [768, 2]
    b36 = jnp.concatenate([params["b3"], params["b6"]], axis=1)            # [1, 2]

    cast = lambda a: a.astype(weight_dtype)
    return {
        "w14": cast(w14), "b14": b14.astype(jnp.float32),
        "w2": cast(w2), "b2": b2.astype(jnp.float32),
        "w5": cast(w5), "b5": b5.astype(jnp.float32),
        "w36": cast(w36), "b36": b36.astype(jnp.float32),
    }


# ------------------------------ reference ----------------------------------- #
def critic_forward_ref(x, u, params):
    xu = jnp.concatenate([x, u], axis=1).astype(jnp.float32)
    h1 = jnp.maximum(xu @ params["w1"] + params["b1"], 0.0)
    h1 = jnp.maximum(h1 @ params["w2"] + params["b2"], 0.0)
    q1 = h1 @ params["w3"] + params["b3"]
    h2 = jnp.maximum(xu @ params["w4"] + params["b4"], 0.0)
    h2 = jnp.maximum(h2 @ params["w5"] + params["b5"], 0.0)
    q2 = h2 @ params["w6"] + params["b6"]
    return q1, q2


if __name__ == "__main__":
    key = jax.random.PRNGKey(0)
    k_p, k_x, k_u = jax.random.split(key, 3)

    batch, state_dim, action_dim = 2, 8, 4
    params = init_critic_params(k_p, state_dim, action_dim)
    packed = pack_critic_params(params, state_dim)

    x = jax.random.normal(k_x, (batch, state_dim), jnp.float32)
    u = jax.random.normal(k_u, (batch, action_dim), jnp.float32)

    q1, q2 = critic_forward(x, u, packed)
    jax.block_until_ready((q1, q2))

    q1_ref, q2_ref = critic_forward_ref(x, u, params)
    assert q1.shape == (batch, 1) and q2.shape == (batch, 1)
    # bf16 weights / bf16 matmul operands with f32 accumulation -> loosened tolerance.
    assert jnp.allclose(q1, q1_ref, atol=2e-2, rtol=2e-2)
    assert jnp.allclose(q2, q2_ref, atol=2e-2, rtol=2e-2)

    # Also exercise the multi-tile grid path (grid > 1, non-trivial padding).
    kx2, ku2 = jax.random.split(jax.random.PRNGKey(1))
    B2 = 600
    x2 = jax.random.normal(kx2, (B2, state_dim), jnp.float32)
    u2 = jax.random.normal(ku2, (B2, action_dim), jnp.float32)
    q1b, q2b = critic_forward(x2, u2, packed)
    jax.block_until_ready((q1b, q2b))
    q1b_ref, q2b_ref = critic_forward_ref(x2, u2, params)
    assert q1b.shape == (B2, 1) and q2b.shape == (B2, 1)
    assert jnp.allclose(q1b, q1b_ref, atol=2e-2, rtol=2e-2)
    assert jnp.allclose(q2b, q2b_ref, atol=2e-2, rtol=2e-2)

    print("KERNEL_OK")
</pallas_src>

<mosaic_0001>
module attributes {stable_mosaic.version = 11 : i64} {
  func.func @_critic_kernel(%arg0: i32, %arg1: memref<8x12xbf16, #tpu.memory_space<vmem>>, %arg2: memref<12x1024xbf16, #tpu.memory_space<vmem>>, %arg3: memref<1x1024xf32, #tpu.memory_space<vmem>>, %arg4: memref<512x384xbf16, #tpu.memory_space<vmem>>, %arg5: memref<1x384xf32, #tpu.memory_space<vmem>>, %arg6: memref<512x384xbf16, #tpu.memory_space<vmem>>, %arg7: memref<1x384xf32, #tpu.memory_space<vmem>>, %arg8: memref<768x2xbf16, #tpu.memory_space<vmem>>, %arg9: memref<1x2xf32, #tpu.memory_space<vmem>>, %arg10: memref<8x2xf32, #tpu.memory_space<vmem>>) attributes {dimension_semantics = [#tpu.dimension_semantics<parallel>], iteration_bounds = array<i64: 1>, scalar_prefetch = 0 : i64, scratch_operands = 0 : i64, tpu.core_type = #tpu.core_type<tc>, window_params = [{transform_indices = @transform_0, window_bounds = array<i64: 8, 12>}, {pipeline_mode = #tpu.pipeline_mode<synchronous>, transform_indices = @transform_1, window_bounds = array<i64: 12, 1024>}, {pipeline_mode = #tpu.pipeline_mode<synchronous>, transform_indices = @transform_2, window_bounds = array<i64: 1, 1024>}, {pipeline_mode = #tpu.pipeline_mode<synchronous>, transform_indices = @transform_3, window_bounds = array<i64: 512, 384>}, {pipeline_mode = #tpu.pipeline_mode<synchronous>, transform_indices = @transform_4, window_bounds = array<i64: 1, 384>}, {pipeline_mode = #tpu.pipeline_mode<synchronous>, transform_indices = @transform_5, window_bounds = array<i64: 512, 384>}, {pipeline_mode = #tpu.pipeline_mode<synchronous>, transform_indices = @transform_6, window_bounds = array<i64: 1, 384>}, {pipeline_mode = #tpu.pipeline_mode<synchronous>, transform_indices = @transform_7, window_bounds = array<i64: 768, 2>}, {pipeline_mode = #tpu.pipeline_mode<synchronous>, transform_indices = @transform_8, window_bounds = array<i64: 1, 2>}, {transform_indices = @transform_9, window_bounds = array<i64: 8, 2>}]} {
    %c0 = arith.constant 0 : index
    %c0_0 = arith.constant 0 : index
    %0 = vector.load %arg1[%c0, %c0_0] : memref<8x12xbf16, #tpu.memory_space<vmem>>, vector<8x12xbf16>
    %c0_1 = arith.constant 0 : index
    %c0_2 = arith.constant 0 : index
    %1 = vector.load %arg2[%c0_1, %c0_2] : memref<12x1024xbf16, #tpu.memory_space<vmem>>, vector<12x1024xbf16>
    %cst = arith.constant dense<0.000000e+00> : vector<8x1024xf32>
    %2 = tpu.matmul %0, %1, %cst {dimension_numbers = #tpu.dot_dimension_numbers<[1], [0], [0], [1], [0, 0, 1, 1], [], []>} : vector<8x12xbf16>, vector<12x1024xbf16>, vector<8x1024xf32> -> vector<8x1024xf32>
    %c0_3 = arith.constant 0 : index
    %c0_4 = arith.constant 0 : index
    %3 = vector.load %arg3[%c0_3, %c0_4] : memref<1x1024xf32, #tpu.memory_space<vmem>>, vector<1x1024xf32>
    %4 = vector.broadcast %3 : vector<1x1024xf32> to vector<8x1024xf32>
    %5 = arith.addf %2, %4 : vector<8x1024xf32>
    %cst_5 = arith.constant 0.000000e+00 : f32
    %6 = vector.broadcast %cst_5 : f32 to vector<8x1024xf32>
    %7 = arith.maximumf %5, %6 : vector<8x1024xf32>
    %8 = arith.truncf %7 : vector<8x1024xf32> to vector<8x1024xbf16>
    %9 = vector.extract_strided_slice %8 {offsets = [0, 0], sizes = [8, 512], strides = [1, 1]} : vector<8x1024xbf16> to vector<8x512xbf16>
    %10 = vector.extract_strided_slice %8 {offsets = [0, 512], sizes = [8, 512], strides = [1, 1]} : vector<8x1024xbf16> to vector<8x512xbf16>
    %c0_6 = arith.constant 0 : index
    %c0_7 = arith.constant 0 : index
    %11 = vector.load %arg4[%c0_6, %c0_7] : memref<512x384xbf16, #tpu.memory_space<vmem>>, vector<512x384xbf16>
    %cst_8 = arith.constant dense<0.000000e+00> : vector<8x384xf32>
    %12 = tpu.matmul %9, %11, %cst_8 {dimension_numbers = #tpu.dot_dimension_numbers<[1], [0], [0], [1], [0, 0, 1, 1], [], []>} : vector<8x512xbf16>, vector<512x384xbf16>, vector<8x384xf32> -> vector<8x384xf32>
    %c0_9 = arith.constant 0 : index
    %c0_10 = arith.constant 0 : index
    %13 = vector.load %arg5[%c0_9, %c0_10] : memref<1x384xf32, #tpu.memory_space<vmem>>, vector<1x384xf32>
    %14 = vector.broadcast %13 : vector<1x384xf32> to vector<8x384xf32>
    %15 = arith.addf %12, %14 : vector<8x384xf32>
    %cst_11 = arith.constant 0.000000e+00 : f32
    %16 = vector.broadcast %cst_11 : f32 to vector<8x384xf32>
    %17 = arith.maximumf %15, %16 : vector<8x384xf32>
    %18 = arith.truncf %17 : vector<8x384xf32> to vector<8x384xbf16>
    %c0_12 = arith.constant 0 : index
    %c0_13 = arith.constant 0 : index
    %19 = vector.load %arg6[%c0_12, %c0_13] : memref<512x384xbf16, #tpu.memory_space<vmem>>, vector<512x384xbf16>
    %cst_14 = arith.constant dense<0.000000e+00> : vector<8x384xf32>
    %20 = tpu.matmul %10, %19, %cst_14 {dimension_numbers = #tpu.dot_dimension_numbers<[1], [0], [0], [1], [0, 0, 1, 1], [], []>} : vector<8x512xbf16>, vector<512x384xbf16>, vector<8x384xf32> -> vector<8x384xf32>
    %c0_15 = arith.constant 0 : index
    %c0_16 = arith.constant 0 : index
    %21 = vector.load %arg7[%c0_15, %c0_16] : memref<1x384xf32, #tpu.memory_space<vmem>>, vector<1x384xf32>
    %22 = vector.broadcast %21 : vector<1x384xf32> to vector<8x384xf32>
    %23 = arith.addf %20, %22 : vector<8x384xf32>
    %cst_17 = arith.constant 0.000000e+00 : f32
    %24 = vector.broadcast %cst_17 : f32 to vector<8x384xf32>
    %25 = arith.maximumf %23, %24 : vector<8x384xf32>
    %26 = arith.truncf %25 : vector<8x384xf32> to vector<8x384xbf16>
    %c0_18 = arith.constant 0 : index
    %c0_19 = arith.constant 0 : index
    %27 = vector.load %arg8[%c0_18, %c0_19] : memref<768x2xbf16, #tpu.memory_space<vmem>>, vector<768x2xbf16>
    %28 = vector.extract_strided_slice %27 {offsets = [0, 0], sizes = [384, 2], strides = [1, 1]} : vector<768x2xbf16> to vector<384x2xbf16>
    %cst_20 = arith.constant dense<0.000000e+00> : vector<8x2xf32>
    %29 = tpu.matmul %18, %28, %cst_20 {dimension_numbers = #tpu.dot_dimension_numbers<[1], [0], [0], [1], [0, 0, 1, 1], [], []>} : vector<8x384xbf16>, vector<384x2xbf16>, vector<8x2xf32> -> vector<8x2xf32>
    %30 = vector.extract_strided_slice %27 {offsets = [384, 0], sizes = [384, 2], strides = [1, 1]} : vector<768x2xbf16> to vector<384x2xbf16>
    %cst_21 = arith.constant dense<0.000000e+00> : vector<8x2xf32>
    %31 = tpu.matmul %26, %30, %cst_21 {dimension_numbers = #tpu.dot_dimension_numbers<[1], [0], [0], [1], [0, 0, 1, 1], [], []>} : vector<8x384xbf16>, vector<384x2xbf16>, vector<8x2xf32> -> vector<8x2xf32>
    %32 = arith.addf %29, %31 : vector<8x2xf32>
    %c0_22 = arith.constant 0 : index
    %c0_23 = arith.constant 0 : index
    %33 = vector.load %arg9[%c0_22, %c0_23] : memref<1x2xf32, #tpu.memory_space<vmem>>, vector<1x2xf32>
    %34 = vector.broadcast %33 : vector<1x2xf32> to vector<8x2xf32>
    %35 = arith.addf %32, %34 : vector<8x2xf32>
    %c0_24 = arith.constant 0 : index
    %c0_25 = arith.constant 0 : index
    %36 = vector.load %arg10[%c0_24, %c0_25] : memref<8x2xf32, #tpu.memory_space<vmem>>, vector<8x2xf32>
    tpu.vector_store %arg10[%c0_24, %c0_25], %35 {strides = array<i32>} : memref<8x2xf32, #tpu.memory_space<vmem>>, vector<8x2xf32>,
    return
  }
  func.func @transform_0(%arg0: i32) -> (i32, i32) {
    %c0_i32 = arith.constant 0 : i32
    %c0_i32_0 = arith.constant 0 : i32
    return %arg0, %c0_i32 : i32, i32
  }
  func.func @transform_1(%arg0: i32) -> (i32, i32) {
    %c0_i32 = arith.constant 0 : i32
    %c0_i32_0 = arith.constant 0 : i32
    %c0_i32_1 = arith.constant 0 : i32
    return %c0_i32, %c0_i32_0 : i32, i32
  }
  func.func @transform_2(%arg0: i32) -> (i32, i32) {
    %c0_i32 = arith.constant 0 : i32
    %c0_i32_0 = arith.constant 0 : i32
    %c0_i32_1 = arith.constant 0 : i32
    return %c0_i32, %c0_i32_0 : i32, i32
  }
  func.func @transform_3(%arg0: i32) -> (i32, i32) {
    %c0_i32 = arith.constant 0 : i32
    %c0_i32_0 = arith.constant 0 : i32
    %c0_i32_1 = arith.constant 0 : i32
    return %c0_i32, %c0_i32_0 : i32, i32
  }
  func.func @transform_4(%arg0: i32) -> (i32, i32) {
    %c0_i32 = arith.constant 0 : i32
    %c0_i32_0 = arith.constant 0 : i32
    %c0_i32_1 = arith.constant 0 : i32
    return %c0_i32, %c0_i32_0 : i32, i32
  }
  func.func @transform_5(%arg0: i32) -> (i32, i32) {
    %c0_i32 = arith.constant 0 : i32
    %c0_i32_0 = arith.constant 0 : i32
    %c0_i32_1 = arith.constant 0 : i32
    return %c0_i32, %c0_i32_0 : i32, i32
  }
  func.func @transform_6(%arg0: i32) -> (i32, i32) {
    %c0_i32 = arith.constant 0 : i32
    %c0_i32_0 = arith.constant 0 : i32
    %c0_i32_1 = arith.constant 0 : i32
    return %c0_i32, %c0_i32_0 : i32, i32
  }
  func.func @transform_7(%arg0: i32) -> (i32, i32) {
    %c0_i32 = arith.constant 0 : i32
    %c0_i32_0 = arith.constant 0 : i32
    %c0_i32_1 = arith.constant 0 : i32
    return %c0_i32, %c0_i32_0 : i32, i32
  }
  func.func @transform_8(%arg0: i32) -> (i32, i32) {
    %c0_i32 = arith.constant 0 : i32
    %c0_i32_0 = arith.constant 0 : i32
    %c0_i32_1 = arith.constant 0 : i32
    return %c0_i32, %c0_i32_0 : i32, i32
  }
  func.func @transform_9(%arg0: i32) -> (i32, i32) {
    %c0_i32 = arith.constant 0 : i32
    %c0_i32_0 = arith.constant 0 : i32
    return %arg0, %c0_i32 : i32, i32
  }
}

</mosaic_0001>

<bundles_post_ra>
// kernel: critic_forward.1
= control target key start
LH: loop header
LB: loop body
LE: loop exit
PB: predicated region body
PF: predicated region fallthrough
CT: control target
= control target key end

     0   :  { %14 = vsyncpa [#allocation3], 0  ;;  %s3717_s0 = inlined_call_operand.vmem [shape: bf16[8,12], index: 0, kind: input, shape index: {}]   ;;  %s3718_s1 = inlined_call_operand.vmem [shape: bf16[12,1024], index: 1, kind: input, shape index: {}]   ;;  %s3719_s2 = inlined_call_operand.vmem [shape: f32[1,1024], index: 2, kind: input, shape index: {}]   ;;  %s3720_s3 = inlined_call_operand.hbm [shape: bf16[512,384], index: 3, kind: input, shape index: {}]   ;;  %s3721_s4 = inlined_call_operand.vmem [shape: f32[1,384], index: 4, kind: input, shape index: {}]   ;;  %s3722_s5 = inlined_call_operand.hbm [shape: bf16[512,384], index: 5, kind: input, shape index: {}]   ;;  %s3723_s6 = inlined_call_operand.vmem [shape: f32[1,384], index: 6, kind: input, shape index: {}]   ;;  %s3724_s7 = inlined_call_operand.vmem [shape: bf16[768,2], index: 7, kind: input, shape index: {}]   ;;  %s3725_s8 = inlined_call_operand.vmem [shape: f32[1,2], index: 8, kind: input, shape index: {}]   ;;  %s3726_s9 = inlined_call_operand.vmem [shape: f32[8,2], index: 9, kind: output, shape index: {}]  }
   0x1   :  { %15 = vsyncpa [#allocation5], 0  ;;  %s3365_s30 = smov [#allocation2]  }
   0x2   :  { %s27_s10 = sshll.u32 %s3365_s30, 4  ;;  %s28_s10 = int_to_ptr.vmem [resolvable:$true] %s27_s10 }
   0x3   :  { %s3329_s11 = scalar_lea.vmem %s28_s10, 12288  ;;  %p3334_p1 = scmp.lt.s32.totalorder %s28_s10, %s28_s10 }
   0x4   :  { %p3330_p0 = scmp.ne.s32.totalorder %s28_s10, %s3329_s11  ;;  %p3335_p2 = scmp.lt.s32.totalorder %s3329_s11, %s3329_s11 }
   0x6   :  { %p3336_p3 = por %p3335_p2, %p3334_p1 }
   0x8   :  { %p3337_p4 = pnand %p3336_p3, %p3330_p0 }
   0xa   :  { %3340 = shalt.err (!%p3337_p4)
}
   0xb   :  { %s3366_s12 = smov 192   ;;  %s3367_s13 = smov 12  }
   0xc   :  { %33 = dma.hbm_to_vmem [thread:$0]  %s3720_s3, 12288, %s28_s10, [#allocation3], %s3366_s12, %s3366_s12, %s3367_s13  }
   0xd   :  { %s3368_s16 = smov [#allocation4]  }
   0xe   :  { %s41_s17 = sshll.u32 %s3368_s16, 4  ;;  %s42_s17 = int_to_ptr.vmem [resolvable:$true] %s41_s17 }
   0xf   :  { %s3349_s18 = scalar_lea.vmem %s42_s17, 12288  ;;  %p3354_p6 = scmp.lt.s32.totalorder %s42_s17, %s42_s17 }
  0x10   :  { %p3350_p5 = scmp.ne.s32.totalorder %s42_s17, %s3349_s18  ;;  %p3355_p7 = scmp.lt.s32.totalorder %s3349_s18, %s3349_s18 }
  0x12   :  { %p3356_p8 = por %p3355_p7, %p3354_p6 }
  0x14   :  { %p3357_p9 = pnand %p3356_p8, %p3350_p5 }
  0x16   :  { %3360 = shalt.err (!%p3357_p9)
}
  0x17   :  { %47 = dma.hbm_to_vmem [thread:$0]  %s3722_s5, 12288, %s42_s17, [#allocation5], %s3366_s12, %s3366_s12, %s3367_s13  }
  0x18   :  { %3361 = dma.done.wait [#allocation3], 12288  }
  0x19   :  { %3362 = vsyncadd [#allocation3], 4294955008 }
  0x1a   :  { %3363 = dma.done.wait [#allocation5], 12288  }
  0x1b   :  { %3364 = vsyncadd [#allocation5], 4294955008  ;;  %v3369_v0 = vmov 0   ;;  %v62_v1 = vld [vmem:[%s3718_s1] sm:$0xff]  ;;  %vm148_vm0 = vcmask 1045504   ;;  %v63_v3 = vld [vmem:[%s3718_s1 + $0x8] sm:$0xff] }
  0x1c   :  { %205 = vmatprep.mubr.bf16.mxu0 %v3369_v0  ;;  %246 = vmatprep.mubr.bf16.mxu1 %v3369_v0  ;;  %v66_v2 = vld [vmem:[%s3718_s1 + $0x20] sm:$0x33]  ;;  %v67_v5 = vld [vmem:[%s3718_s1 + $0x28] sm:$0x33]  ;;  %v64_v7 = vld [vmem:[%s3718_s1 + $0x10] sm:$0xff]  ;;  %vm144_vm1 = vcmask 97280  }
  0x1d   :  { %v2564_v4 = vcombine.high %v62_v1, %v66_v2  ;;  %v2563_v6 = vcombine.low %v62_v1, %v66_v2  ;;  %v2566_v8 = vcombine.high %v63_v3, %v67_v5  ;;  %v2565_v9 = vcombine.low %v63_v3, %v67_v5  ;;  %v68_v10 = vld [vmem:[%s3718_s1 + $0x30] sm:$0x33]  ;;  %v65_v11 = vld [vmem:[%s3718_s1 + $0x18] sm:$0xff]  ;;  %v61_v18 = vld [vmem:[%s3717_s0] sm:$0xf] }
  0x1e   :  { %v69_v12 = vld [vmem:[%s3718_s1 + $0x38] sm:$0x33]  ;;  %v2568_v14 = vcombine.high %v64_v7, %v68_v10  ;;  %v2567_v15 = vcombine.low %v64_v7, %v68_v10  ;;  %v3017_v24 = vld [vmem:[#allocation2 + $0xa8] ss:$12 sps:$4 sm:$0xff]   ;;  %v3037_v34 = vld [vmem:[#allocation2 + $0x64] ss:$12 sps:$4 sm:$0xff]  }
  0x1f   :  { %2571 = vmatprep.subr.msk.bf16.mxu0 %vm148_vm0, %v2564_v4  ;;  %v150_v13 = vsel %vm148_vm0, %v2563_v6, 0  ;;  %v2570_v16 = vcombine.high %v65_v11, %v69_v12  ;;  %2573 = vmatprep.subr.msk.bf16.mxu1 %vm148_vm0, %v2566_v8  ;;  %v156_v17 = vsel %vm148_vm0, %v2565_v9, 0  ;;  %v2569_v19 = vcombine.low %v65_v11, %v69_v12  ;;  %v3019_v22 = vld [vmem:[#allocation2 + $0xac] ss:$12 sps:$4 sm:$0xff]   ;;  %v3020_v25 = vld [vmem:[#allocation2 + $0x228] ss:$12 sps:$4 sm:$0xff]  }
  0x20   :  { %188 = vmatpush1.bf16.msra.mxu0 %v150_v13  ;;  %229 = vmatpush1.bf16.msra.mxu1 %v156_v17  ;;  %v162_v20 = vsel %vm148_vm0, %v2567_v15, 0  ;;  %v3022_v23 = vld [vmem:[#allocation2 + $0x22c] ss:$12 sps:$4 sm:$0xff]   ;;  %v3025_v26 = vld [vmem:[#allocation2 + $0x94] ss:$12 sps:$4 sm:$0xff]   ;;  %vm3371_vm2 = vmmov 0  }
  0x21   :  { %2575 = vmatprep.subr.msk.bf16.mxu0 %vm148_vm0, %v2568_v14  ;;  %2577 = vmatprep.subr.msk.bf16.mxu1 %vm148_vm0, %v2570_v16  ;;  %v168_v21 = vsel %vm148_vm0, %v2569_v19, 0  ;;  %v3028_v27 = vld [vmem:[#allocation2 + $0x214] ss:$12 sps:$4 sm:$0xff]   ;;  %v3023_v28 = vld [vmem:[#allocation2 + $0x90] ss:$12 sps:$4 sm:$0xff]   ;;  %vm2555_vm3 = vcmask 15360  }
  0x22   :  { %v3026_v29 = vld [vmem:[#allocation2 + $0x210] ss:$12 sps:$4 sm:$0xff]   ;;  %v3029_v32 = vld [vmem:[#allocation2 + $0x78] ss:$12 sps:$4 sm:$0xff]   ;;  %v3035_v36 = vld [vmem:[#allocation2 + $0x60] ss:$12 sps:$4 sm:$0xff]  }
  0x23   :  { %2572 = vmatmul.mubr.msk.bf16.vlgmr.msra.gmra.mxu0 %vm144_vm1, %v61_v18  ;;  %2574 = vmatmul.mubr.msk.bf16.vlgmr.msra.gmra.mxu1 %vm144_vm1, %v61_v18  ;;  %v3031_v30 = vld [vmem:[#allocation2 + $0x7c] ss:$12 sps:$4 sm:$0xff]   ;;  %v3032_v33 = vld [vmem:[#allocation2 + $0x1f8] ss:$12 sps:$4 sm:$0xff]   ;;  %v3038_v37 = vld [vmem:[#allocation2 + $0x1e0] ss:$12 sps:$4 sm:$0xff]  }
  0x24   :  { %270 = vmatpush1.bf16.msra.mxu0 %v162_v20  ;;  %287 = vmatprep.mubr.bf16.mxu0 %v3369_v0  ;;  %v3034_v31 = vld [vmem:[#allocation2 + $0x1fc] ss:$12 sps:$4 sm:$0xff]   ;;  %v3040_v35 = vld [vmem:[#allocation2 + $0x1e4] ss:$12 sps:$4 sm:$0xff]   ;;  %v3043_v38 = vld [vmem:[#allocation2 + $0x4c] ss:$12 sps:$4 sm:$0xff]  }
  0x25   :  { %311 = vmatpush1.bf16.msra.mxu1 %v168_v21  ;;  %328 = vmatprep.mubr.bf16.mxu1 %v3369_v0  ;;  %v3046_v39 = vld [vmem:[#allocation2 + $0x1cc] ss:$12 sps:$4 sm:$0xff]   ;;  %v3041_v40 = vld [vmem:[#allocation2 + $0x48] ss:$12 sps:$4 sm:$0xff]   ;;  %v3047_v44 = vld [vmem:[#allocation2 + $0x30] ss:$12 sps:$4 sm:$0xff]  }
  0x26   :  { %1010 = vmatprep.subr.bf16.mxu0 %v3019_v22  ;;  %1051 = vmatprep.subr.bf16.mxu1 %v3022_v23  ;;  %v3044_v41 = vld [vmem:[#allocation2 + $0x1c8] ss:$12 sps:$4 sm:$0xff]   ;;  %v3050_v45 = vld [vmem:[#allocation2 + $0x1b0] ss:$12 sps:$4 sm:$0xff]   ;;  %v3053_v48 = vld [vmem:[#allocation2 + $0x18] ss:$12 sps:$4 sm:$0xff]  }
  0x27   :  { %v3049_v42 = vld [vmem:[#allocation2 + $0x34] ss:$12 sps:$4 sm:$0xff]   ;;  %v3055_v46 = vld [vmem:[#allocation2 + $0x1c] ss:$12 sps:$4 sm:$0xff]   ;;  %v3056_v49 = vld [vmem:[#allocation2 + $0x198] ss:$12 sps:$4 sm:$0xff]  }
  0x28   :  { %v3052_v43 = vld [vmem:[#allocation2 + $0x1b4] ss:$12 sps:$4 sm:$0xff]   ;;  %v3058_v47 = vld [vmem:[#allocation2 + $0x19c] ss:$12 sps:$4 sm:$0xff]   ;;  %v3061_v50 = vld [vmem:[#allocation2 + $0x4] ss:$12 sps:$4 sm:$0xff]  }
  0x29   :  { %v3059_v51 = vld [vmem:[#allocation2] ss:$12 sps:$4 sm:$0xff]   ;;  %v3064_v52 = vld [vmem:[#allocation2 + $0x184] ss:$12 sps:$4 sm:$0xff]   ;;  %v3065_v56 = vld [vmem:[#allocation2 + $0x168] ss:$12 sps:$4 sm:$0xff]  }
  0x2a   :  { %v3062_v53 = vld [vmem:[#allocation2 + $0x180] ss:$12 sps:$4 sm:$0xff]   ;;  %v3068_v57 = vld [vmem:[#allocation2 + $0x2e8] ss:$12 sps:$4 sm:$0xff]   ;;  %v3071_v60 = vld [vmem:[#allocation2 + $0x150] ss:$12 sps:$4 sm:$0xff]  }
  0x2b   :  { %2576 = vmatmul.mubr.msk.bf16.vlgmr.msra.gmra.mxu0 %vm144_vm1, %v61_v18  ;;  %2578 = vmatmul.mubr.msk.bf16.vlgmr.msra.gmra.mxu1 %vm144_vm1, %v61_v18  ;;  %v3067_v54 = vld [vmem:[#allocation2 + $0x16c] ss:$12 sps:$4 sm:$0xff]   ;;  %v3073_v58 = vld [vmem:[#allocation2 + $0x154] ss:$12 sps:$4 sm:$0xff]   ;;  %v3074_v61 = vld [vmem:[#allocation2 + $0x2d0] ss:$12 sps:$4 sm:$0xff]  }
  0x2c   :  { %1011 = vmatpush1.bf16.msra.mxu0 %v3017_v24  ;;  %1052 = vmatpush1.bf16.msra.mxu1 %v3020_v25  ;;  %v3070_v55 = vld [vmem:[#allocation2 + $0x2ec] ss:$12 sps:$4 sm:$0xff]   ;;  %v3076_v59 = vld [vmem:[#allocation2 + $0x2d4] ss:$12 sps:$4 sm:$0xff]   ;;  %v3079_v62 = vld [vmem:[#allocation2 + $0x13c] ss:$12 sps:$4 sm:$0xff]   ;;  %v72_v24 = vlaneseq }
  0x2d   :  { %1012 = vmatprep.subr.bf16.mxu0 %v3025_v26  ;;  %1053 = vmatprep.subr.bf16.mxu1 %v3028_v27  ;;  %v3082_v63 = vld [vmem:[#allocation2 + $0x2bc] ss:$12 sps:$4 sm:$0xff]   ;;  %v3077_v0 = vld [vmem:[#allocation2 + $0x138] ss:$12 sps:$4 sm:$0xff]   ;;  %v3083_v4 = vld [vmem:[#allocation2 + $0x120] ss:$12 sps:$4 sm:$0xff]  }
  0x2e   :  { %v3080_v1 = vld [vmem:[#allocation2 + $0x2b8] ss:$12 sps:$4 sm:$0xff]   ;;  %v3086_v5 = vld [vmem:[#allocation2 + $0x2a0] ss:$12 sps:$4 sm:$0xff]   ;;  %v3089_v8 = vld [vmem:[#allocation2 + $0x108] ss:$12 sps:$4 sm:$0xff]  }
  0x2f   :  { %v3085_v2 = vld [vmem:[#allocation2 + $0x124] ss:$12 sps:$4 sm:$0xff]   ;;  %v3091_v6 = vld [vmem:[#allocation2 + $0x10c] ss:$12 sps:$4 sm:$0xff]   ;;  %v3092_v9 = vld [vmem:[#allocation2 + $0x288] ss:$12 sps:$4 sm:$0xff]  }
  0x30   :  { %1013 = vmatpush1.bf16.msra.mxu0 %v3023_v28  ;;  %1054 = vmatpush1.bf16.msra.mxu1 %v3026_v29  ;;  %v3088_v3 = vld [vmem:[#allocation2 + $0x2a4] ss:$12 sps:$4 sm:$0xff]   ;;  %v3094_v7 = vld [vmem:[#allocation2 + $0x28c] ss:$12 sps:$4 sm:$0xff]   ;;  %v3097_v10 = vld [vmem:[#allocation2 + $0xf4] ss:$12 sps:$4 sm:$0xff]  }
  0x31   :  { %1014 = vmatprep.subr.bf16.mxu0 %v3031_v30  ;;  %1055 = vmatprep.subr.bf16.mxu1 %v3034_v31  ;;  %v3100_v11 = vld [vmem:[#allocation2 + $0x274] ss:$12 sps:$4 sm:$0xff]   ;;  %v3095_v12 = vld [vmem:[#allocation2 + $0xf0] ss:$12 sps:$4 sm:$0xff]   ;;  %v3101_v16 = vld [vmem:[#allocation2 + $0xd8] ss:$12 sps:$4 sm:$0xff]  }
  0x32   :  { %v3098_v13 = vld [vmem:[#allocation2 + $0x270] ss:$12 sps:$4 sm:$0xff]   ;;  %v3104_v17 = vld [vmem:[#allocation2 + $0x258] ss:$12 sps:$4 sm:$0xff]   ;;  %v3107_v20 = vld [vmem:[#allocation2 + $0xc0] ss:$12 sps:$4 sm:$0xff]  }
  0x33   :  { %v3103_v14 = vld [vmem:[#allocation2 + $0xdc] ss:$12 sps:$4 sm:$0xff]   ;;  %v3109_v18 = vld [vmem:[#allocation2 + $0xc4] ss:$12 sps:$4 sm:$0xff]   ;;  %v3110_v21 = vld [vmem:[#allocation2 + $0x240] ss:$12 sps:$4 sm:$0xff]  }
  0x34   :  { %1015 = vmatpush1.bf16.msra.mxu0 %v3029_v32  ;;  %1056 = vmatpush1.bf16.msra.mxu1 %v3032_v33  ;;  %v3106_v15 = vld [vmem:[#allocation2 + $0x25c] ss:$12 sps:$4 sm:$0xff]   ;;  %v3112_v19 = vld [vmem:[#allocation2 + $0x244] ss:$12 sps:$4 sm:$0xff]   ;;  %v3467_v25 = vshrl.u32 %v72_v24, 7 }
  0x35   :  { %1016 = vmatprep.subr.bf16.mxu0 %v3037_v34  ;;  %1057 = vmatprep.subr.bf16.mxu1 %v3040_v35  ;;  %v3113_v22 = vld [vmem:[#allocation2 + $0x170] ss:$12 sps:$4 sm:$0xff]   ;;  %v3475_v27 = vld [vmem:[%s3719_s2] sm:$0xff] }
  0x36   :  { %v3114_v23 = vld [vmem:[#allocation2 + $0x2f0] ss:$12 sps:$4 sm:$0xff]   ;;  %v3470_v26 = vsub.s32 0, %v3467_v25  ;;  %v3478_v28 = vsub.s32 2, %v3467_v25  ;;  %v3481_v29 = vsub.s32 1, %v3467_v25  ;;  %v86_v30 = vsub.s32 3, %v3467_v25 }
  0x37   :  { %v3138_v24 = vld [vmem:[#allocation2 + $0x260] ss:$12 sps:$4 sm:$0xff]  }
  0x38   :  { %1017 = vmatpush1.bf16.msra.mxu0 %v3035_v36  ;;  %1058 = vmatpush1.bf16.msra.mxu1 %v3038_v37  ;;  %v75_v31 = vrot.slane %v3475_v27, %v3470_v26  ;;  %v83_v32 = vrot.slane %v3475_v27, %v3478_v28  ;;  %v79_v33 = vrot.slane %v3475_v27, %v3481_v29 }
  0x39   :  { %1018 = vmatprep.subr.bf16.mxu0 %v3043_v38  ;;  %1059 = vmatprep.subr.bf16.mxu1 %v3046_v39  ;;  %v87_v35 = vrot.slane %v3475_v27, %v86_v30 }
  0x3c   :  { %1019 = vmatpush1.bf16.msra.mxu0 %v3041_v40  ;;  %1060 = vmatpush1.bf16.msra.mxu1 %v3044_v41 }
  0x3d   :  { %1020 = vmatprep.subr.bf16.mxu0 %v3049_v42  ;;  %1061 = vmatprep.subr.bf16.mxu1 %v3052_v43 }
  0x40   :  { %1021 = vmatpush1.bf16.msra.mxu0 %v3047_v44  ;;  %1062 = vmatpush1.bf16.msra.mxu1 %v3050_v45 }
  0x41   :  { %1022 = vmatprep.subr.bf16.mxu0 %v3055_v46  ;;  %1063 = vmatprep.subr.bf16.mxu1 %v3058_v47 }
  0x44   :  { %1023 = vmatpush1.bf16.msra.mxu0 %v3053_v48  ;;  %1064 = vmatpush1.bf16.msra.mxu1 %v3056_v49 }
  0x45   :  { %1024 = vmatprep.subr.bf16.mxu0 %v3061_v50  ;;  %1065 = vmatprep.subr.bf16.mxu1 %v3064_v52 }
  0x48   :  { %1025 = vmatpush1.bf16.msra.mxu0 %v3059_v51  ;;  %1066 = vmatpush1.bf16.msra.mxu1 %v3062_v53  ;;  %v3115_v53 = vld [vmem:[#allocation2 + $0xb0] ss:$12 sps:$4 sm:$0xff]  }
  0x49   :  { %1026 = vmatprep.subr.bf16.mxu0 %v3067_v54  ;;  %1067 = vmatprep.subr.bf16.mxu1 %v3070_v55 }
  0x4c   :  { %1027 = vmatpush2.bf16.msra.mxu0 %v3065_v56  ;;  %1068 = vmatpush2.bf16.msra.mxu1 %v3068_v57  ;;  %v3116_v56 = vld [vmem:[#allocation2 + $0x230] ss:$12 sps:$4 sm:$0xff]  }
  0x4d   :  { %1028 = vmatprep.subr.bf16.mxu0 %v3073_v58  ;;  %1069 = vmatprep.subr.bf16.mxu1 %v3076_v59  ;;  %v3117_v58 = vld [vmem:[#allocation2 + $0x158] ss:$12 sps:$4 sm:$0xff]  }
  0x50   :  { %1029 = vmatpush2.bf16.msra.mxu0 %v3071_v60  ;;  %1070 = vmatpush2.bf16.msra.mxu1 %v3074_v61  ;;  %v3118_v60 = vld [vmem:[#allocation2 + $0x2d8] ss:$12 sps:$4 sm:$0xff]  }
  0x51   :  { %1030 = vmatprep.subr.bf16.mxu0 %v3079_v62  ;;  %1071 = vmatprep.subr.bf16.mxu1 %v3082_v63  ;;  %v3119_v62 = vld [vmem:[#allocation2 + $0x98] ss:$12 sps:$4 sm:$0xff]  }
  0x54   :  { %1031 = vmatpush2.bf16.msra.mxu0 %v3077_v0  ;;  %1072 = vmatpush2.bf16.msra.mxu1 %v3080_v1  ;;  %v3120_v0 = vld [vmem:[#allocation2 + $0x218] ss:$12 sps:$4 sm:$0xff]   ;;  %v3121_v1 = vld [vmem:[#allocation2 + $0x140] ss:$12 sps:$4 sm:$0xff]  }
  0x55   :  { %1032 = vmatprep.subr.bf16.mxu0 %v3085_v2  ;;  %1073 = vmatprep.subr.bf16.mxu1 %v3088_v3  ;;  %v3122_v3 = vld [vmem:[#allocation2 + $0x2c0] ss:$12 sps:$4 sm:$0xff]  }
  0x58   :  { %1033 = vmatpush2.bf16.msra.mxu0 %v3083_v4  ;;  %1074 = vmatpush2.bf16.msra.mxu1 %v3086_v5 }
  0x59   :  { %1034 = vmatprep.subr.bf16.mxu0 %v3091_v6  ;;  %1075 = vmatprep.subr.bf16.mxu1 %v3094_v7  ;;  %v3123_v6 = vld [vmem:[#allocation2 + $0x80] ss:$12 sps:$4 sm:$0xff]  }
  0x5c   :  { %1035 = vmatpush2.bf16.msra.mxu0 %v3089_v8  ;;  %1076 = vmatpush2.bf16.msra.mxu1 %v3092_v9  ;;  %v3124_v8 = vld [vmem:[#allocation2 + $0x200] ss:$12 sps:$4 sm:$0xff]   ;;  %v3125_v9 = vld [vmem:[#allocation2 + $0x128] ss:$12 sps:$4 sm:$0xff]  }
  0x5d   :  { %1036 = vmatprep.subr.bf16.mxu0 %v3097_v10  ;;  %1077 = vmatprep.subr.bf16.mxu1 %v3100_v11  ;;  %v3126_v10 = vld [vmem:[#allocation2 + $0x2a8] ss:$12 sps:$4 sm:$0xff]  }
  0x5e   :  { %v3127_v11 = vld [vmem:[#allocation2 + $0x68] ss:$12 sps:$4 sm:$0xff]  }
  0x60   :  { %1037 = vmatpush2.bf16.msra.mxu0 %v3095_v12  ;;  %1078 = vmatpush2.bf16.msra.mxu1 %v3098_v13  ;;  %v3128_v12 = vld [vmem:[#allocation2 + $0x1e8] ss:$12 sps:$4 sm:$0xff]   ;;  %v3129_v13 = vld [vmem:[#allocation2 + $0x110] ss:$12 sps:$4 sm:$0xff]  }
  0x61   :  { %1038 = vmatprep.subr.bf16.mxu0 %v3103_v14  ;;  %1079 = vmatprep.subr.bf16.mxu1 %v3106_v15  ;;  %v3130_v14 = vld [vmem:[#allocation2 + $0x290] ss:$12 sps:$4 sm:$0xff]  }
  0x62   :  { %v3131_v15 = vld [vmem:[#allocation2 + $0x50] ss:$12 sps:$4 sm:$0xff]  }
  0x64   :  { %1039 = vmatpush2.bf16.msra.mxu0 %v3101_v16  ;;  %1080 = vmatpush2.bf16.msra.mxu1 %v3104_v17  ;;  %v3132_v16 = vld [vmem:[#allocation2 + $0x1d0] ss:$12 sps:$4 sm:$0xff]   ;;  %v3133_v17 = vld [vmem:[#allocation2 + $0xf8] ss:$12 sps:$4 sm:$0xff]  }
  0x65   :  { %1040 = vmatprep.subr.bf16.mxu0 %v3109_v18  ;;  %1081 = vmatprep.subr.bf16.mxu1 %v3112_v19  ;;  %v3134_v18 = vld [vmem:[#allocation2 + $0x278] ss:$12 sps:$4 sm:$0xff]   ;;  %v94_v19 = vsub.s32 5, %v3467_v25 }
  0x67   :  { %v95_v30 = vrot.slane %v3475_v27, %v94_v19  ;;  %v3204_v19 = vld [vmem:[#allocation4 + $0x2d4] ss:$12 sps:$4 sm:$0xff]  }
  0x68   :  { %1041 = vmatpush2.bf16.msra.mxu0 %v3107_v20  ;;  %1082 = vmatpush2.bf16.msra.mxu1 %v3110_v21  ;;  %v102_v20 = vsub.s32 7, %v3467_v25  ;;  %v3135_v21 = vld [vmem:[#allocation2 + $0x38] ss:$12 sps:$4 sm:$0xff]  }
  0x69   :  { %2820 = vmatprep.subr.bf16.mxu0 %v3113_v22  ;;  %2842 = vmatprep.subr.bf16.mxu1 %v3114_v23  ;;  %v3136_v22 = vld [vmem:[#allocation2 + $0x1b8] ss:$12 sps:$4 sm:$0xff]   ;;  %v3137_v23 = vld [vmem:[#allocation2 + $0xe0] ss:$12 sps:$4 sm:$0xff]  }
  0xe3   :  { %v207_v34 = vpop.f32.mrf.mxu0  ;;  %v248_v37 = vpop.f32.mrf.mxu1 }
  0xe4   :  { %v208_v36 = vadd.f32 %v207_v34, %v75_v31  ;;  %v249_v38 = vadd.f32 %v248_v37, %v83_v32  ;;  %v103_v31 = vrot.slane %v3475_v27, %v102_v20  ;;  %v3139_v32 = vld [vmem:[#allocation2 + $0x20] ss:$12 sps:$4 sm:$0xff]   ;;  %v3141_v34 = vld [vmem:[#allocation2 + $0xc8] ss:$12 sps:$4 sm:$0xff]   ;;  %v3199_v20 = vld [vmem:[#allocation4 + $0x150] ss:$12 sps:$4 sm:$0xff]  }
  0xe5   :  { %v209_v39 = vpop.f32.mrf.mxu0  ;;  %v250_v41 = vpop.f32.mrf.mxu1 }
  0xe6   :  { %v210_v40 = vadd.f32 %v209_v39, %v79_v33  ;;  %v337_v42 = vmax.f32 %v208_v36, 0.0  ;;  %v339_v43 = vmax.f32 %v249_v38, 0.0  ;;  %v251_v44 = vadd.f32 %v250_v41, %v87_v35  ;;  %v3140_v33 = vld [vmem:[#allocation2 + $0x1a0] ss:$12 sps:$4 sm:$0xff]   ;;  %v3142_v35 = vld [vmem:[#allocation2 + $0x248] ss:$12 sps:$4 sm:$0xff]  }
  0xe7   :  { %v211_v45 = vpop.f32.mrf.mxu0  ;;  %v252_v47 = vpop.f32.mrf.mxu1  ;;  %v3143_v38 = vld [vmem:[#allocation2 + $0x8] ss:$12 sps:$4 sm:$0xff]   ;;  %v3150_v41 = vld [vmem:[#allocation4 + $0x22c] ss:$12 sps:$4 sm:$0xff]  }
  0xe8   :  { %v338_v46 = vmax.f32 %v210_v40, 0.0  ;;  %v340_v48 = vmax.f32 %v251_v44, 0.0  ;;  %v3491_v50 = vpack.c.bf16 %v339_v43, %v339_v43  ;;  %v3493_v54 = vpack.c.bf16 %v337_v42, %v337_v42  ;;  %v3144_v39 = vld [vmem:[#allocation2 + $0x188] ss:$12 sps:$4 sm:$0xff]   ;;  %v3147_v40 = vld [vmem:[#allocation4 + $0xac] ss:$12 sps:$4 sm:$0xff]  }
  0xe9   :  { %v212_v49 = vpop.f32.mrf.mxu0  ;;  %v253_v52 = vpop.f32.mrf.mxu1  ;;  %v3145_v44 = vld [vmem:[#allocation4 + $0xa8] ss:$12 sps:$4 sm:$0xff]  }
  0xea   :  { %v346_v51 = vpack.c.bf16 %v338_v46, %v338_v46  ;;  %v348_v55 = vpack.c.bf16 %v340_v48, %v340_v48  ;;  %v3148_v45 = vld [vmem:[#allocation4 + $0x228] ss:$12 sps:$4 sm:$0xff]   ;;  %v3154_v52 = vld [vmem:[#allocation4 + $0x210] ss:$12 sps:$4 sm:$0xff]  }
  0xeb   :  { %v3495_v57 = vpop.f32.mrf.mxu0  ;;  %v3497_v59 = vpop.f32.mrf.mxu1  ;;  %v3153_v46 = vld [vmem:[#allocation4 + $0x94] ss:$12 sps:$4 sm:$0xff]  }
  0xec   :  { %1042 = vmatprep.mubr.bf16.mxu0 %v346_v51  ;;  %1083 = vmatprep.mubr.bf16.mxu1 %v348_v55  ;;  %v3156_v47 = vld [vmem:[#allocation4 + $0x214] ss:$12 sps:$4 sm:$0xff]  }
  0xed   :  { %1043 = vmatmul.mubr.bf16.vlgmr.msra.gmra.mxu0 %v3493_v54  ;;  %v291_v61 = vpop.f32.mrf.mxu0  ;;  %1084 = vmatmul.mubr.bf16.vlgmr.msra.gmra.mxu1 %v3491_v50  ;;  %v332_v63 = vpop.f32.mrf.mxu1 }
  0xee   :  { %2821 = vmatpush3.bf16.msra.mxu0 %v3115_v53  ;;  %2843 = vmatpush3.bf16.msra.mxu1 %v3116_v56  ;;  %v292_v36 = vadd.f32 %v291_v61, %v95_v30  ;;  %v333_v37 = vadd.f32 %v332_v63, %v103_v31  ;;  %v3159_v53 = vld [vmem:[#allocation4 + $0x7c] ss:$12 sps:$4 sm:$0xff]   ;;  %v3157_v56 = vld [vmem:[#allocation4 + $0x78] ss:$12 sps:$4 sm:$0xff]   ;;  %v3166_v61 = vld [vmem:[#allocation4 + $0x1e0] ss:$12 sps:$4 sm:$0xff]  }
  0xef   :  { %1124 = vmatprep.mubr.bf16.mxu0 %v346_v51  ;;  %v293_v2 = vpop.f32.mrf.mxu0  ;;  %1164 = vmatprep.mubr.bf16.mxu1 %v348_v55  ;;  %v334_v4 = vpop.f32.mrf.mxu1  ;;  %v3151_v51 = vld [vmem:[#allocation4 + $0x90] ss:$12 sps:$4 sm:$0xff]   ;;  %v3174_v63 = vld [vmem:[#allocation4 + $0x1cc] ss:$12 sps:$4 sm:$0xff]  }
  0xf0   :  { %2822 = vmatprep.subr.bf16.mxu0 %v3117_v58  ;;  %2844 = vmatprep.subr.bf16.mxu1 %v3118_v60  ;;  %v342_v42 = vmax.f32 %v292_v36, 0.0  ;;  %v344_v43 = vmax.f32 %v333_v37, 0.0  ;;  %v3162_v55 = vld [vmem:[#allocation4 + $0x1fc] ss:$12 sps:$4 sm:$0xff]   ;;  %v3165_v58 = vld [vmem:[#allocation4 + $0x64] ss:$12 sps:$4 sm:$0xff]  }
  0xf1   :  { %v294_v5 = vpop.f32.mrf.mxu0  ;;  %v335_v7 = vpop.f32.mrf.mxu1  ;;  %v3163_v60 = vld [vmem:[#allocation4 + $0x60] ss:$12 sps:$4 sm:$0xff]   ;;  %v3175_v4 = vld [vmem:[#allocation4 + $0x30] ss:$12 sps:$4 sm:$0xff]   ;;  %v3208_v30 = vld [vmem:[#allocation4 + $0x2b8] ss:$12 sps:$4 sm:$0xff]  }
  0xf2   :  { %2823 = vmatpush3.bf16.msra.mxu0 %v3119_v62  ;;  %2845 = vmatpush3.bf16.msra.mxu1 %v3120_v0  ;;  %v3505_v48 = vpack.c.bf16 %v342_v42, %v342_v42  ;;  %v3508_v49 = vpack.c.bf16 %v344_v43, %v344_v43  ;;  %v3171_v62 = vld [vmem:[#allocation4 + $0x4c] ss:$12 sps:$4 sm:$0xff]   ;;  %v3169_v0 = vld [vmem:[#allocation4 + $0x48] ss:$12 sps:$4 sm:$0xff]   ;;  %v3178_v5 = vld [vmem:[#allocation4 + $0x1b0] ss:$12 sps:$4 sm:$0xff]  }
  0xf3   :  { %2824 = vmatprep.subr.bf16.mxu0 %v3121_v1  ;;  %2846 = vmatprep.subr.bf16.mxu1 %v3122_v3  ;;  %v3172_v1 = vld [vmem:[#allocation4 + $0x1c8] ss:$12 sps:$4 sm:$0xff]   ;;  %v3213_v31 = vld [vmem:[#allocation4 + $0x124] ss:$12 sps:$4 sm:$0xff]   ;;  %v3222_v36 = vld [vmem:[#allocation4 + $0x28c] ss:$12 sps:$4 sm:$0xff]  }
  0xf4   :  { %v3177_v2 = vld [vmem:[#allocation4 + $0x34] ss:$12 sps:$4 sm:$0xff]   ;;  %v3186_v7 = vld [vmem:[#allocation4 + $0x19c] ss:$12 sps:$4 sm:$0xff]  }
  0xf5   :  { %v3180_v3 = vld [vmem:[#allocation4 + $0x1b4] ss:$12 sps:$4 sm:$0xff]  }
  0xf6   :  { %2825 = vmatpush3.bf16.msra.mxu0 %v3123_v6  ;;  %2847 = vmatpush3.bf16.msra.mxu1 %v3124_v8  ;;  %v3183_v6 = vld [vmem:[#allocation4 + $0x1c] ss:$12 sps:$4 sm:$0xff]   ;;  %v3181_v8 = vld [vmem:[#allocation4 + $0x18] ss:$12 sps:$4 sm:$0xff]   ;;  %v3228_v42 = vld [vmem:[#allocation4 + $0x274] ss:$12 sps:$4 sm:$0xff]  }
  0xf7   :  { %2826 = vmatprep.subr.bf16.mxu0 %v3125_v9  ;;  %2848 = vmatprep.subr.bf16.mxu1 %v3126_v10  ;;  %v3184_v9 = vld [vmem:[#allocation4 + $0x198] ss:$12 sps:$4 sm:$0xff]   ;;  %v3217_v37 = vld [vmem:[#allocation4 + $0x108] ss:$12 sps:$4 sm:$0xff]  }
  0xf8   :  { %v3189_v10 = vld [vmem:[#allocation4 + $0x4] ss:$12 sps:$4 sm:$0xff]  }
  0xfa   :  { %2827 = vmatpush3.bf16.msra.mxu0 %v3127_v11  ;;  %2849 = vmatpush3.bf16.msra.mxu1 %v3128_v12  ;;  %v3192_v11 = vld [vmem:[#allocation4 + $0x184] ss:$12 sps:$4 sm:$0xff]   ;;  %v3187_v12 = vld [vmem:[#allocation4] ss:$12 sps:$4 sm:$0xff]  }
  0xfb   :  { %2828 = vmatprep.subr.bf16.mxu0 %v3129_v13  ;;  %2850 = vmatprep.subr.bf16.mxu1 %v3130_v14  ;;  %v3190_v13 = vld [vmem:[#allocation4 + $0x180] ss:$12 sps:$4 sm:$0xff]  }
  0xfc   :  { %v3195_v14 = vld [vmem:[#allocation4 + $0x16c] ss:$12 sps:$4 sm:$0xff]  }
  0xfe   :  { %2829 = vmatpush3.bf16.msra.mxu0 %v3131_v15  ;;  %2851 = vmatpush3.bf16.msra.mxu1 %v3132_v16  ;;  %v3198_v15 = vld [vmem:[#allocation4 + $0x2ec] ss:$12 sps:$4 sm:$0xff]   ;;  %v3193_v16 = vld [vmem:[#allocation4 + $0x168] ss:$12 sps:$4 sm:$0xff]  }
  0xff   :  { %2830 = vmatprep.subr.bf16.mxu0 %v3133_v17  ;;  %2852 = vmatprep.subr.bf16.mxu1 %v3134_v18  ;;  %v3196_v17 = vld [vmem:[#allocation4 + $0x2e8] ss:$12 sps:$4 sm:$0xff]  }
 0x100   :  { %v3201_v18 = vld [vmem:[#allocation4 + $0x154] ss:$12 sps:$4 sm:$0xff]  }
 0x102   :  { %2831 = vmatpush3.bf16.msra.mxu0 %v3135_v21  ;;  %2853 = vmatpush3.bf16.msra.mxu1 %v3136_v22  ;;  %v3202_v21 = vld [vmem:[#allocation4 + $0x2d0] ss:$12 sps:$4 sm:$0xff]  }
 0x103   :  { %2832 = vmatprep.subr.bf16.mxu0 %v3137_v23  ;;  %2854 = vmatprep.subr.bf16.mxu1 %v3138_v24  ;;  %v3207_v22 = vld [vmem:[#allocation4 + $0x13c] ss:$12 sps:$4 sm:$0xff]   ;;  %v3205_v24 = vld [vmem:[#allocation4 + $0x138] ss:$12 sps:$4 sm:$0xff]  }
 0x104   :  { %v3210_v23 = vld [vmem:[#allocation4 + $0x2bc] ss:$12 sps:$4 sm:$0xff]  }
 0x106   :  { %2833 = vmatpush3.bf16.msra.mxu0 %v3139_v32  ;;  %2855 = vmatpush3.bf16.msra.mxu1 %v3140_v33  ;;  %v3216_v32 = vld [vmem:[#allocation4 + $0x2a4] ss:$12 sps:$4 sm:$0xff]   ;;  %v3211_v33 = vld [vmem:[#allocation4 + $0x120] ss:$12 sps:$4 sm:$0xff]  }
 0x107   :  { %2834 = vmatprep.subr.bf16.mxu0 %v3141_v34  ;;  %2856 = vmatprep.subr.bf16.mxu1 %v3142_v35  ;;  %v3214_v34 = vld [vmem:[#allocation4 + $0x2a0] ss:$12 sps:$4 sm:$0xff]  }
 0x108   :  { %v3219_v35 = vld [vmem:[#allocation4 + $0x10c] ss:$12 sps:$4 sm:$0xff]  }
 0x10a   :  { %2835 = vmatpush3.bf16.msra.mxu0 %v3143_v38  ;;  %2857 = vmatpush3.bf16.msra.mxu1 %v3144_v39  ;;  %v98_v38 = vsub.s32 6, %v3467_v25  ;;  %v3220_v39 = vld [vmem:[#allocation4 + $0x288] ss:$12 sps:$4 sm:$0xff]  }
 0x10b   :  { %1835 = vmatprep.subr.bf16.mxu0 %v3147_v40  ;;  %1876 = vmatprep.subr.bf16.mxu1 %v3150_v41  ;;  %v90_v40 = vsub.s32 4, %v3467_v25  ;;  %v3225_v41 = vld [vmem:[#allocation4 + $0xf4] ss:$12 sps:$4 sm:$0xff]  }
 0x10c   :  { %v99_v43 = vrot.slane %v3475_v27, %v98_v38  ;;  %v3279_v38 = vld [vmem:[%s3724_s7 + $0x120] sm:$0xff]  }
 0x10d   :  { %1125 = vmatmul.mubr.bf16.vlgmr.msra.gmra.mxu0 %v3493_v54  ;;  %1165 = vmatmul.mubr.bf16.vlgmr.msra.gmra.mxu1 %v3491_v50  ;;  %v3160_v54 = vld [vmem:[#allocation4 + $0x1f8] ss:$12 sps:$4 sm:$0xff]  }
 0x10e   :  { %1836 = vmatpush1.bf16.msra.mxu0 %v3145_v44  ;;  %1877 = vmatpush1.bf16.msra.mxu1 %v3148_v45  ;;  %v3168_v50 = vld [vmem:[#allocation4 + $0x1e4] ss:$12 sps:$4 sm:$0xff]   ;;  %v91_v45 = vrot.slane %v3475_v27, %v90_v40  ;;  %v3235_v27 = vld [vmem:[#allocation4 + $0xc0] ss:$12 sps:$4 sm:$0xff]   ;;  %v3281_v40 = vld [vmem:[%s3724_s7 + $0x118] sm:$0xff]  }
 0x10f   :  { %1837 = vmatprep.subr.bf16.mxu0 %v3153_v46  ;;  %1878 = vmatprep.subr.bf16.mxu1 %v3156_v47  ;;  %v3223_v44 = vld [vmem:[#allocation4 + $0xf0] ss:$12 sps:$4 sm:$0xff]  }
 0x110   :  { %1867 = vmatprep.mubr.bf16.mxu0 %v3505_v48  ;;  %1908 = vmatprep.mubr.bf16.mxu1 %v3508_v49  ;;  %v3226_v46 = vld [vmem:[#allocation4 + $0x270] ss:$12 sps:$4 sm:$0xff]   ;;  %v290_v25 = vadd.f32 %v3495_v57, %v91_v45  ;;  %v3286_v45 = vld [vmem:[%s3724_s7 + $0xc8] sm:$0xff]  }
 0x111   :  { %v3231_v47 = vld [vmem:[#allocation4 + $0xdc] ss:$12 sps:$4 sm:$0xff]  }
 0x112   :  { %1838 = vmatpush1.bf16.msra.mxu0 %v3151_v51  ;;  %1879 = vmatpush1.bf16.msra.mxu1 %v3154_v52  ;;  %v3234_v51 = vld [vmem:[#allocation4 + $0x25c] ss:$12 sps:$4 sm:$0xff]   ;;  %v331_v52 = vadd.f32 %v3497_v59, %v99_v43  ;;  %v3284_v43 = vld [vmem:[%s3724_s7 + $0xd0] sm:$0xff]  }
 0x113   :  { %1839 = vmatprep.subr.bf16.mxu0 %v3159_v53  ;;  %1880 = vmatprep.subr.bf16.mxu1 %v3162_v55  ;;  %v3229_v53 = vld [vmem:[#allocation4 + $0xd8] ss:$12 sps:$4 sm:$0xff]   ;;  %v3242_v59 = vld [vmem:[#allocation4 + $0x2f0] ss:$12 sps:$4 sm:$0xff]  }
 0x114   :  { %v3232_v55 = vld [vmem:[#allocation4 + $0x258] ss:$12 sps:$4 sm:$0xff]   ;;  %v3243_v57 = vld [vmem:[#allocation4 + $0xb0] ss:$12 sps:$4 sm:$0xff]  }
 0x116   :  { %1840 = vmatpush1.bf16.msra.mxu0 %v3157_v56  ;;  %1881 = vmatpush1.bf16.msra.mxu1 %v3160_v54  ;;  %v3237_v56 = vld [vmem:[#allocation4 + $0xc4] ss:$12 sps:$4 sm:$0xff]  }
 0x117   :  { %1841 = vmatprep.subr.bf16.mxu0 %v3165_v58  ;;  %1882 = vmatprep.subr.bf16.mxu1 %v3168_v50  ;;  %v3240_v54 = vld [vmem:[#allocation4 + $0x244] ss:$12 sps:$4 sm:$0xff]   ;;  %v343_v58 = vmax.f32 %v331_v52, 0.0  ;;  %v341_v50 = vmax.f32 %v290_v25, 0.0  ;;  %v3370_v52 = vmov 0.0  }
 0x118   :  { %v3294_v25 = vld [vmem:[%s3724_s7 + $0x170] sm:$0xff]  }
 0x11a   :  { %1842 = vmatpush1.bf16.msra.mxu0 %v3163_v60  ;;  %1883 = vmatpush1.bf16.msra.mxu1 %v3166_v61  ;;  %v3238_v60 = vld [vmem:[#allocation4 + $0x240] ss:$12 sps:$4 sm:$0xff]   ;;  %v3241_v61 = vld [vmem:[#allocation4 + $0x170] ss:$12 sps:$4 sm:$0xff]  }
 0x11b   :  { %1843 = vmatprep.subr.bf16.mxu0 %v3171_v62  ;;  %1884 = vmatprep.subr.bf16.mxu1 %v3174_v63  ;;  %v3519_v62 = vpack.c.bf16 %v343_v58, %v343_v58  ;;  %v3521_v63 = vpack.c.bf16 %v341_v50, %v341_v50 }
 0x11e   :  { %1844 = vmatpush1.bf16.msra.mxu0 %v3169_v0  ;;  %1885 = vmatpush1.bf16.msra.mxu1 %v3172_v1  ;;  %v3244_v0 = vld [vmem:[#allocation4 + $0x230] ss:$12 sps:$4 sm:$0xff]   ;;  %v3245_v1 = vld [vmem:[#allocation4 + $0x158] ss:$12 sps:$4 sm:$0xff]  }
 0x11f   :  { %1845 = vmatprep.subr.bf16.mxu0 %v3177_v2  ;;  %1886 = vmatprep.subr.bf16.mxu1 %v3180_v3  ;;  %v3246_v2 = vld [vmem:[#allocation4 + $0x2d8] ss:$12 sps:$4 sm:$0xff]  }
 0x120   :  { %v3247_v3 = vld [vmem:[#allocation4 + $0x98] ss:$12 sps:$4 sm:$0xff]  }
 0x122   :  { %1846 = vmatpush1.bf16.msra.mxu0 %v3175_v4  ;;  %1887 = vmatpush1.bf16.msra.mxu1 %v3178_v5  ;;  %v3248_v4 = vld [vmem:[#allocation4 + $0x218] ss:$12 sps:$4 sm:$0xff]   ;;  %v3249_v5 = vld [vmem:[#allocation4 + $0x140] ss:$12 sps:$4 sm:$0xff]  }
 0x123   :  { %1847 = vmatprep.subr.bf16.mxu0 %v3183_v6  ;;  %1888 = vmatprep.subr.bf16.mxu1 %v3186_v7  ;;  %v3250_v6 = vld [vmem:[#allocation4 + $0x2c0] ss:$12 sps:$4 sm:$0xff]  }
 0x124   :  { %v3251_v7 = vld [vmem:[#allocation4 + $0x80] ss:$12 sps:$4 sm:$0xff]  }
 0x126   :  { %1848 = vmatpush1.bf16.msra.mxu0 %v3181_v8  ;;  %1889 = vmatpush1.bf16.msra.mxu1 %v3184_v9  ;;  %v3252_v8 = vld [vmem:[#allocation4 + $0x200] ss:$12 sps:$4 sm:$0xff]   ;;  %v3253_v9 = vld [vmem:[#allocation4 + $0x128] ss:$12 sps:$4 sm:$0xff]  }
 0x127   :  { %1849 = vmatprep.subr.bf16.mxu0 %v3189_v10  ;;  %1890 = vmatprep.subr.bf16.mxu1 %v3192_v11  ;;  %v3254_v10 = vld [vmem:[#allocation4 + $0x2a8] ss:$12 sps:$4 sm:$0xff]  }
 0x128   :  { %v3255_v11 = vld [vmem:[#allocation4 + $0x68] ss:$12 sps:$4 sm:$0xff]  }
 0x12a   :  { %1850 = vmatpush1.bf16.msra.mxu0 %v3187_v12  ;;  %1891 = vmatpush1.bf16.msra.mxu1 %v3190_v13  ;;  %v3257_v12 = vld [vmem:[#allocation4 + $0x110] ss:$12 sps:$4 sm:$0xff]  }
 0x12b   :  { %1851 = vmatprep.subr.bf16.mxu0 %v3195_v14  ;;  %1892 = vmatprep.subr.bf16.mxu1 %v3198_v15  ;;  %v3258_v13 = vld [vmem:[#allocation4 + $0x290] ss:$12 sps:$4 sm:$0xff]   ;;  %v3261_v15 = vld [vmem:[#allocation4 + $0xf8] ss:$12 sps:$4 sm:$0xff]  }
 0x12c   :  { %v3260_v14 = vld [vmem:[#allocation4 + $0x1d0] ss:$12 sps:$4 sm:$0xff]  }
 0x12e   :  { %1852 = vmatpush2.bf16.msra.mxu0 %v3193_v16  ;;  %1893 = vmatpush2.bf16.msra.mxu1 %v3196_v17  ;;  %v3262_v16 = vld [vmem:[#allocation4 + $0x278] ss:$12 sps:$4 sm:$0xff]  }
 0x12f   :  { %1853 = vmatprep.subr.bf16.mxu0 %v3201_v18  ;;  %1894 = vmatprep.subr.bf16.mxu1 %v3204_v19  ;;  %v3263_v17 = vld [vmem:[#allocation4 + $0x38] ss:$12 sps:$4 sm:$0xff]   ;;  %v3265_v19 = vld [vmem:[#allocation4 + $0xe0] ss:$12 sps:$4 sm:$0xff]  }
 0x130   :  { %v3264_v18 = vld [vmem:[#allocation4 + $0x1b8] ss:$12 sps:$4 sm:$0xff]  }
 0x132   :  { %1854 = vmatpush2.bf16.msra.mxu0 %v3199_v20  ;;  %1895 = vmatpush2.bf16.msra.mxu1 %v3202_v21  ;;  %v3266_v20 = vld [vmem:[#allocation4 + $0x260] ss:$12 sps:$4 sm:$0xff]  }
 0x133   :  { %1855 = vmatprep.subr.bf16.mxu0 %v3207_v22  ;;  %1896 = vmatprep.subr.bf16.mxu1 %v3210_v23  ;;  %v3267_v21 = vld [vmem:[#allocation4 + $0x20] ss:$12 sps:$4 sm:$0xff]   ;;  %v3269_v23 = vld [vmem:[#allocation4 + $0xc8] ss:$12 sps:$4 sm:$0xff]  }
 0x134   :  { %v3268_v22 = vld [vmem:[#allocation4 + $0x1a0] ss:$12 sps:$4 sm:$0xff]  }
 0x136   :  { %1856 = vmatpush2.bf16.msra.mxu0 %v3205_v24  ;;  %1897 = vmatpush2.bf16.msra.mxu1 %v3208_v30  ;;  %v3270_v24 = vld [vmem:[#allocation4 + $0x248] ss:$12 sps:$4 sm:$0xff]  }
 0x137   :  { %1857 = vmatprep.subr.bf16.mxu0 %v3213_v31  ;;  %1898 = vmatprep.subr.bf16.mxu1 %v3216_v32  ;;  %v3271_v30 = vld [vmem:[#allocation4 + $0x8] ss:$12 sps:$4 sm:$0xff]   ;;  %v3273_v32 = vld [vmem:[%s3724_s7 + $0x138] sm:$0xff]  }
 0x138   :  { %v3272_v31 = vld [vmem:[#allocation4 + $0x188] ss:$12 sps:$4 sm:$0xff]  }
 0x13a   :  { %1858 = vmatpush2.bf16.msra.mxu0 %v3211_v33  ;;  %1899 = vmatpush2.bf16.msra.mxu1 %v3214_v34  ;;  %v3274_v33 = vld [vmem:[%s3724_s7 + $0xf8] sm:$0xff]   ;;  %v3275_v34 = vld [vmem:[%s3724_s7 + $0x130] sm:$0xff]  }
 0x13b   :  { %1859 = vmatprep.subr.bf16.mxu0 %v3219_v35  ;;  %1900 = vmatprep.subr.bf16.mxu1 %v3222_v36  ;;  %v3276_v35 = vld [vmem:[%s3724_s7 + $0xf0] sm:$0xff]   ;;  %v3277_v36 = vld [vmem:[%s3724_s7 + $0x128] sm:$0xff]  }
 0x13e   :  { %1860 = vmatpush2.bf16.msra.mxu0 %v3217_v37  ;;  %1901 = vmatpush2.bf16.msra.mxu1 %v3220_v39  ;;  %v3278_v37 = vld [vmem:[%s3724_s7 + $0xe8] sm:$0xff]   ;;  %v3280_v39 = vld [vmem:[%s3724_s7 + $0xe0] sm:$0xff]  }
 0x13f   :  { %1861 = vmatprep.subr.bf16.mxu0 %v3225_v41  ;;  %1902 = vmatprep.subr.bf16.mxu1 %v3228_v42  ;;  %v3282_v41 = vld [vmem:[%s3724_s7 + $0xd8] sm:$0xff]   ;;  %v3283_v42 = vld [vmem:[%s3724_s7 + $0x110] sm:$0xff]  }
 0x142   :  { %1862 = vmatpush2.bf16.msra.mxu0 %v3223_v44  ;;  %1903 = vmatpush2.bf16.msra.mxu1 %v3226_v46  ;;  %v3285_v44 = vld [vmem:[%s3724_s7 + $0x108] sm:$0xff]   ;;  %v3287_v46 = vld [vmem:[%s3724_s7 + $0x100] sm:$0xff]  }
 0x143   :  { %1863 = vmatprep.subr.bf16.mxu0 %v3231_v47  ;;  %1904 = vmatprep.subr.bf16.mxu1 %v3234_v51  ;;  %v3288_v47 = vld [vmem:[%s3724_s7 + $0xc0] sm:$0xff]   ;;  %v3289_v51 = vld [vmem:[%s3724_s7 + $0x78] sm:$0xff]  }
 0x146   :  { %1864 = vmatpush2.bf16.msra.mxu0 %v3229_v53  ;;  %1905 = vmatpush2.bf16.msra.mxu1 %v3232_v55  ;;  %v3291_v53 = vld [vmem:[%s3724_s7 + $0x178] sm:$0xff]   ;;  %v3297_v55 = vld [vmem:[%s3724_s7 + $0x168] sm:$0xff]  }
 0x147   :  { %1865 = vmatprep.subr.bf16.mxu0 %v3237_v56  ;;  %1906 = vmatprep.subr.bf16.mxu1 %v3240_v54  ;;  %v3300_v56 = vld [vmem:[%s3724_s7 + $0x160] sm:$0xff]  }
 0x148   :  { %v481_v54 = vld [vmem:[%s3721_s4] sm:$0x7] }
 0x149   :  { %v486_v58 = vrot.slane %v481_v54, %v3470_v26  ;;  %v490_v50 = vrot.slane %v481_v54, %v3481_v29 }
 0x14a   :  { %1866 = vmatpush2.bf16.msra.mxu0 %v3235_v27  ;;  %1907 = vmatpush2.bf16.msra.mxu1 %v3238_v60  ;;  %v3303_v27 = vld [vmem:[%s3724_s7 + $0x158] sm:$0xff]  }
 0x14b   :  { %2864 = vmatprep.subr.bf16.mxu0 %v3241_v61  ;;  %2886 = vmatprep.subr.bf16.mxu1 %v3242_v59 }
 0x14d   :  { %1868 = vmatmul.mubr.bf16.vlgmr.msra.gmra.mxu0 %v3521_v63  ;;  %1909 = vmatmul.mubr.bf16.vlgmr.msra.gmra.mxu1 %v3519_v62 }
 0x14e   :  { %2865 = vmatpush3.bf16.msra.mxu0 %v3243_v57  ;;  %1949 = vmatprep.mubr.bf16.mxu0 %v3505_v48  ;;  %v3256_v48 = vld [vmem:[#allocation4 + $0x1e8] ss:$12 sps:$4 sm:$0xff]  }
 0x14f   :  { %2887 = vmatpush3.bf16.msra.mxu1 %v3244_v0  ;;  %1989 = vmatprep.mubr.bf16.mxu1 %v3508_v49  ;;  %v3259_v49 = vld [vmem:[#allocation4 + $0x50] ss:$12 sps:$4 sm:$0xff]  }
 0x150   :  { %2866 = vmatprep.subr.bf16.mxu0 %v3245_v1  ;;  %2888 = vmatprep.subr.bf16.mxu1 %v3246_v2 }
 0x152   :  { %2867 = vmatpush3.bf16.msra.mxu0 %v3247_v3 }
 0x153   :  { %2889 = vmatpush3.bf16.msra.mxu1 %v3248_v4  ;;  %2868 = vmatprep.subr.bf16.mxu0 %v3249_v5  ;;  %v3309_v5 = vld [vmem:[%s3724_s7 + $0x148] sm:$0xff]  }
 0x154   :  { %2890 = vmatprep.subr.bf16.mxu1 %v3250_v6 }
 0x156   :  { %2869 = vmatpush3.bf16.msra.mxu0 %v3251_v7 }
 0x157   :  { %2891 = vmatpush3.bf16.msra.mxu1 %v3252_v8  ;;  %2870 = vmatprep.subr.bf16.mxu0 %v3253_v9  ;;  %v3312_v8 = vld [vmem:[%s3724_s7 + $0x140] sm:$0xff]  }
 0x158   :  { %2892 = vmatprep.subr.bf16.mxu1 %v3254_v10 }
 0x15a   :  { %2871 = vmatpush3.bf16.msra.mxu0 %v3255_v11  ;;  %v494_v11 = vrot.slane %v481_v54, %v3478_v28  ;;  %v3304_v54 = vld [vmem:[%s3724_s7 + $0x50] sm:$0xff]  }
 0x15b   :  { %2893 = vmatpush3.bf16.msra.mxu1 %v3256_v48  ;;  %2872 = vmatprep.subr.bf16.mxu0 %v3257_v12 }
 0x15c   :  { %2894 = vmatprep.subr.bf16.mxu1 %v3258_v13 }
 0x15e   :  { %2873 = vmatpush3.bf16.msra.mxu0 %v3259_v49 }
 0x15f   :  { %2895 = vmatpush3.bf16.msra.mxu1 %v3260_v14  ;;  %2874 = vmatprep.subr.bf16.mxu0 %v3261_v15 }
 0x160   :  { %2896 = vmatprep.subr.bf16.mxu1 %v3262_v16 }
 0x162   :  { %2875 = vmatpush3.bf16.msra.mxu0 %v3263_v17 }
 0x163   :  { %2897 = vmatpush3.bf16.msra.mxu1 %v3264_v18  ;;  %2876 = vmatprep.subr.bf16.mxu0 %v3265_v19 }
 0x164   :  { %2898 = vmatprep.subr.bf16.mxu1 %v3266_v20  ;;  %v1306_v20 = vld [vmem:[%s3723_s6] sm:$0x7] }
 0x166   :  { %2877 = vmatpush3.bf16.msra.mxu0 %v3267_v21  ;;  %v1311_v21 = vrot.slane %v1306_v20, %v3470_v26  ;;  %v3290_v26 = vld [vmem:[%s3724_s7 + $0x38] sm:$0xff]  }
 0x167   :  { %2899 = vmatpush3.bf16.msra.mxu1 %v3268_v22  ;;  %2878 = vmatprep.subr.bf16.mxu0 %v3269_v23  ;;  %v1315_v22 = vrot.slane %v1306_v20, %v3481_v29 }
 0x168   :  { %2900 = vmatprep.subr.bf16.mxu1 %v3270_v24 }
 0x16a   :  { %2879 = vmatpush3.bf16.msra.mxu0 %v3271_v30 }
 0x16b   :  { %2901 = vmatpush3.bf16.msra.mxu1 %v3272_v31  ;;  %2908 = vmatprep.subr.bf16.mxu0 %v3273_v32 }
 0x16c   :  { %2970 = vmatprep.subr.bf16.mxu1 %v3370_v52 }
 0x16d   :  { %1950 = vmatmul.mubr.bf16.vlgmr.msra.gmra.mxu0 %v3521_v63 }
 0x16e   :  { %1990 = vmatmul.mubr.bf16.vlgmr.msra.gmra.mxu1 %v3519_v62  ;;  %2909 = vmatpush3.bf16.msra.mxu0 %v3274_v33  ;;  %v3306_v62 = vld [vmem:[%s3724_s7 + $0x150] sm:$0xff]  }
 0x16f   :  { %2910 = vmatprep.subr.bf16.mxu0 %v3275_v34  ;;  %2971 = vmatpush3.bf16.msra.mxu1 %v3291_v53  ;;  %v3298_v53 = vld [vmem:[%s3724_s7 + $0x60] sm:$0xff]  }
 0x170   :  { %2972 = vmatprep.subr.bf16.mxu1 %v3370_v52  ;;  %2986 = vmatprep.mubr.msk.bf16.mxu1 %vm3371_vm2, %v3370_v52 }
 0x172   :  { %2911 = vmatpush3.bf16.msra.mxu0 %v3276_v35 }
 0x173   :  { %2912 = vmatprep.subr.bf16.mxu0 %v3277_v36  ;;  %2973 = vmatpush3.bf16.msra.mxu1 %v3294_v25  ;;  %v3299_v25 = vld [vmem:[%s3724_s7 + $0x20] sm:$0xff]  }
 0x174   :  { %2974 = vmatprep.subr.bf16.mxu1 %v3370_v52 }
 0x176   :  { %2913 = vmatpush3.bf16.msra.mxu0 %v3278_v37 }
 0x177   :  { %2914 = vmatprep.subr.bf16.mxu0 %v3279_v38  ;;  %2975 = vmatpush3.bf16.msra.mxu1 %v3297_v55  ;;  %v3301_v55 = vld [vmem:[%s3724_s7 + $0x58] sm:$0xff]  }
 0x178   :  { %2976 = vmatprep.subr.bf16.mxu1 %v3370_v52 }
 0x17a   :  { %2915 = vmatpush3.bf16.msra.mxu0 %v3280_v39 }
 0x17b   :  { %2916 = vmatprep.subr.bf16.mxu0 %v3281_v40  ;;  %2977 = vmatpush3.bf16.msra.mxu1 %v3300_v56  ;;  %v3302_v56 = vld [vmem:[%s3724_s7 + $0x18] sm:$0xff]  }
 0x17c   :  { %2978 = vmatprep.subr.bf16.mxu1 %v3370_v52 }
 0x17e   :  { %2917 = vmatpush3.bf16.msra.mxu0 %v3282_v41 }
 0x17f   :  { %2918 = vmatprep.subr.bf16.mxu0 %v3283_v42  ;;  %2979 = vmatpush3.bf16.msra.mxu1 %v3303_v27  ;;  %v3307_v27 = vld [vmem:[%s3724_s7 + $0x48] sm:$0xff]  }
 0x180   :  { %2980 = vmatprep.subr.bf16.mxu1 %v3370_v52 }
 0x182   :  { %2919 = vmatpush3.bf16.msra.mxu0 %v3284_v43 }
 0x183   :  { %2920 = vmatprep.subr.bf16.mxu0 %v3285_v44  ;;  %2981 = vmatpush3.bf16.msra.mxu1 %v3306_v62  ;;  %v3292_v44 = vld [vmem:[%s3724_s7 + $0x70] sm:$0xff]  }
 0x184   :  { %2982 = vmatprep.subr.bf16.mxu1 %v3370_v52 }
 0x186   :  { %2921 = vmatpush3.bf16.msra.mxu0 %v3286_v45 }
 0x187   :  { %2922 = vmatprep.subr.bf16.mxu0 %v3287_v46  ;;  %2983 = vmatpush3.bf16.msra.mxu1 %v3309_v5  ;;  %v3293_v46 = vld [vmem:[%s3724_s7 + $0x30] sm:$0xff]  }
 0x188   :  { %2984 = vmatprep.subr.bf16.mxu1 %v3370_v52 }
 0x18a   :  { %2923 = vmatpush3.bf16.msra.mxu0 %v3288_v47  ;;  %v3295_v47 = vld [vmem:[%s3724_s7 + $0x68] sm:$0xff]  }
 0x18b   :  { %2939 = vmatprep.subr.bf16.mxu0 %v3289_v51  ;;  %2985 = vmatpush3.bf16.msra.mxu1 %v3312_v8  ;;  %v3296_v51 = vld [vmem:[%s3724_s7 + $0x28] sm:$0xff]  }
 0x18c   :  { %2990 = vmatprep.subr.bf16.mxu1 %v3370_v52 }
 0x1ad   :  { %v1044_v60 = vpop.f32.mrf.mxu0  ;;  %v1085_v59 = vpop.f32.mrf.mxu1 }
 0x1ae   :  { %v1045_v61 = vadd.f32 %v1044_v60, %v486_v58  ;;  %v3305_v58 = vld [vmem:[%s3724_s7 + $0x10] sm:$0xff]  }
 0x1af   :  { %v1046_v57 = vpop.f32.mrf.mxu0  ;;  %v1087_v1 = vpop.f32.mrf.mxu1 }
 0x1b0   :  { %v3609_v63 = vadd.f32 %v1085_v59, %v1045_v61  ;;  %v1047_v0 = vadd.f32 %v1046_v57, %v490_v50  ;;  %v1319_v61 = vrot.slane %v1306_v20, %v3478_v28  ;;  %v3308_v59 = vld [vmem:[%s3724_s7 + $0x8] sm:$0xff]   ;;  %v3310_v57 = vld [vmem:[%s3724_s7 + $0x40] sm:$0xff]  }
 0x1b1   :  { %v1048_v2 = vpop.f32.mrf.mxu0  ;;  %v1089_v4 = vpop.f32.mrf.mxu1  ;;  %v3311_v28 = vld [vmem:[%s3724_s7] sm:$0xff]  }
 0x1b2   :  { %v1088_v3 = vadd.f32 %v1087_v1, %v1047_v0 }
 0x1b3   :  { %v1049_v6 = vpop.f32.mrf.mxu0  ;;  %v1090_v7 = vpop.f32.mrf.mxu1 }
 0x1b4   :  { %v1173_v40 = vmax.f32 %v1088_v3, 0.0  ;;  %v1172_v6 = vmax.f32 %v3609_v63, 0.0  ;;  %v3315_v63 = vld [vmem:[%s3724_s7 + $0xa8] sm:$0xff]  }
 0x1b6   :  { %v1176_v45 = vpack.c.bf16 %v1173_v40, %v1173_v40 }
 0x1cd   :  { %v2836_v9 = vpop.f32.mrf.mxu0  ;;  %v2858_v10 = vpop.f32.mrf.mxu1 }
 0x1cf   :  { %v2837_v48 = vpop.f32.mrf.mxu0  ;;  %v2859_v13 = vpop.f32.mrf.mxu1 }
 0x1d0   :  { %v2838_v12 = vadd.f32 %v2837_v48, %v2836_v9  ;;  %v2860_v49 = vadd.f32 %v2859_v13, %v2858_v10  ;;  %v3313_v48 = vld [vmem:[%s3724_s7 + $0xb8] sm:$0xff]   ;;  %v3314_v13 = vld [vmem:[%s3724_s7 + $0xb0] sm:$0xff]  }
 0x1d1   :  { %v2839_v14 = vpop.f32.mrf.mxu0  ;;  %v2861_v16 = vpop.f32.mrf.mxu1 }
 0x1d2   :  { %v1127_v15 = vadd.f32 %v2838_v12, %v494_v11  ;;  %v1175_v11 = vpack.c.bf16 %v1172_v6, %v1172_v6  ;;  %v3317_v14 = vld [vmem:[%s3724_s7 + $0x98] sm:$0xff]   ;;  %v3319_v16 = vld [vmem:[%s3724_s7 + $0x88] sm:$0xff]  }
 0x1d3   :  { %v2840_v17 = vpop.f32.mrf.mxu0  ;;  %v2862_v19 = vpop.f32.mrf.mxu1 }
 0x1d4   :  { %v3623_v18 = vadd.f32 %v2860_v49, %v1127_v15  ;;  %v3316_v49 = vld [vmem:[%s3724_s7 + $0xa0] sm:$0xff]   ;;  %v3318_v15 = vld [vmem:[%s3724_s7 + $0x90] sm:$0xff]  }
 0x1d5   :  { %v3320_v17 = vld [vmem:[%s3724_s7 + $0x80] sm:$0xff]  }
 0x1d6   :  { %v1174_v19 = vmax.f32 %v3623_v18, 0.0 }
 0x1d8   :  { %v1177_v20 = vpack.c.bf16 %v1174_v19, %v1174_v19 }
 0x20d   :  { %v1869_v23 = vpop.f32.mrf.mxu0  ;;  %v1910_v30 = vpop.f32.mrf.mxu1 }
 0x20e   :  { %v1870_v24 = vadd.f32 %v1869_v23, %v1311_v21 }
 0x20f   :  { %v1871_v31 = vpop.f32.mrf.mxu0  ;;  %v1912_v34 = vpop.f32.mrf.mxu1 }
 0x210   :  { %v1911_v32 = vadd.f32 %v1910_v30, %v1870_v24  ;;  %v1872_v33 = vadd.f32 %v1871_v31, %v1315_v22 }
 0x211   :  { %v1873_v35 = vpop.f32.mrf.mxu0  ;;  %v1914_v37 = vpop.f32.mrf.mxu1 }
 0x212   :  { %v1913_v36 = vadd.f32 %v1912_v34, %v1872_v33  ;;  %v1997_v38 = vmax.f32 %v1911_v32, 0.0 }
 0x213   :  { %v1874_v39 = vpop.f32.mrf.mxu0  ;;  %v1915_v42 = vpop.f32.mrf.mxu1 }
 0x214   :  { %v1998_v41 = vmax.f32 %v1913_v36, 0.0  ;;  %v2000_v29 = vpack.c.bf16 %v1997_v38, %v1997_v38 }
 0x216   :  { %v2001_v43 = vpack.c.bf16 %v1998_v41, %v1998_v41  ;;  %v2819_v41 = vld [vmem:[%s3725_s8] ss:$0 sm:$0xff] }
 0x218   :  { %2275 = vmatprep.mubr.bf16.mxu0 %v2001_v43 }
 0x219   :  { %2276 = vmatmul.mubr.bf16.vlgmr.msra.gmra.mxu0 %v2000_v29 }
 0x21a   :  { %2940 = vmatpush3.bf16.msra.mxu0 %v3290_v26  ;;  %2499 = vmatprep.mubr.bf16.mxu0 %v1176_v45 }
 0x21b   :  { %2941 = vmatprep.subr.bf16.mxu0 %v3292_v44 }
 0x21e   :  { %2942 = vmatpush3.bf16.msra.mxu0 %v3293_v46 }
 0x21f   :  { %2943 = vmatprep.subr.bf16.mxu0 %v3295_v47 }
 0x222   :  { %2944 = vmatpush3.bf16.msra.mxu0 %v3296_v51 }
 0x223   :  { %2945 = vmatprep.subr.bf16.mxu0 %v3298_v53 }
 0x226   :  { %2946 = vmatpush3.bf16.msra.mxu0 %v3299_v25 }
 0x227   :  { %2947 = vmatprep.subr.bf16.mxu0 %v3301_v55 }
 0x22a   :  { %2948 = vmatpush3.bf16.msra.mxu0 %v3302_v56 }
 0x22b   :  { %2949 = vmatprep.subr.bf16.mxu0 %v3304_v54 }
 0x22d   :  { %v2880_v50 = vpop.f32.mrf.mxu0 }
 0x22e   :  { %v2902_v60 = vpop.f32.mrf.mxu1  ;;  %2950 = vmatpush3.bf16.msra.mxu0 %v3305_v58 }
 0x22f   :  { %v2881_v62 = vpop.f32.mrf.mxu0  ;;  %2951 = vmatprep.subr.bf16.mxu0 %v3307_v27 }
 0x230   :  { %v2882_v0 = vadd.f32 %v2881_v62, %v2880_v50  ;;  %v2903_v1 = vpop.f32.mrf.mxu1 }
 0x231   :  { %v2883_v2 = vpop.f32.mrf.mxu0  ;;  %v2904_v4 = vadd.f32 %v2903_v1, %v2902_v60 }
 0x232   :  { %v1952_v3 = vadd.f32 %v2882_v0, %v1319_v61  ;;  %v2905_v5 = vpop.f32.mrf.mxu1  ;;  %2952 = vmatpush3.bf16.msra.mxu0 %v3308_v59 }
 0x233   :  { %v2884_v7 = vpop.f32.mrf.mxu0  ;;  %2953 = vmatprep.subr.bf16.mxu0 %v3310_v57 }
 0x234   :  { %v1992_v8 = vadd.f32 %v2904_v4, %v1952_v3  ;;  %v2906_v9 = vpop.f32.mrf.mxu1 }
 0x236   :  { %v1999_v10 = vmax.f32 %v1992_v8, 0.0  ;;  %2954 = vmatpush3.bf16.msra.mxu0 %v3311_v28 }
 0x238   :  { %v2002_v12 = vpack.c.bf16 %v1999_v10, %v1999_v10 }
 0x239   :  { %2500 = vmatmul.mubr.bf16.vlgmr.msra.gmra.mxu0 %v1175_v11 }
 0x23a   :  { %2987 = vmatmul.mubr.bf16.vlgmr.msra.gmra.mxu1 %v2002_v12 }
 0x23b   :  { %2991 = vmatpush3.bf16.msra.mxu1 %v3313_v48  ;;  %3006 = vmatprep.mubr.msk.bf16.mxu1 %vm3371_vm2, %v3370_v52 }
 0x23c   :  { %2992 = vmatprep.subr.bf16.mxu1 %v3370_v52 }
 0x23f   :  { %2993 = vmatpush3.bf16.msra.mxu1 %v3314_v13 }
 0x240   :  { %2994 = vmatprep.subr.bf16.mxu1 %v3370_v52 }
 0x243   :  { %2995 = vmatpush3.bf16.msra.mxu1 %v3315_v63 }
 0x244   :  { %2996 = vmatprep.subr.bf16.mxu1 %v3370_v52 }
 0x247   :  { %2997 = vmatpush3.bf16.msra.mxu1 %v3316_v49 }
 0x248   :  { %2998 = vmatprep.subr.bf16.mxu1 %v3370_v52 }
 0x24b   :  { %2999 = vmatpush3.bf16.msra.mxu1 %v3317_v14 }
 0x24c   :  { %3000 = vmatprep.subr.bf16.mxu1 %v3370_v52 }
 0x24f   :  { %3001 = vmatpush3.bf16.msra.mxu1 %v3318_v15 }
 0x250   :  { %3002 = vmatprep.subr.bf16.mxu1 %v3370_v52 }
 0x253   :  { %3003 = vmatpush3.bf16.msra.mxu1 %v3319_v16 }
 0x254   :  { %3004 = vmatprep.subr.bf16.mxu1 %v3370_v52 }
 0x257   :  { %3005 = vmatpush3.bf16.msra.mxu1 %v3320_v17 }
 0x25a   :  { %3007 = vmatmul.mubr.bf16.vlgmr.msra.gmra.mxu1 %v1177_v20 }
 0x2d9   :  { %v2924_v21 = vpop.f32.mrf.mxu0 }
 0x2db   :  { %v2925_v22 = vpop.f32.mrf.mxu0 }
 0x2dc   :  { %v2926_v38 = vadd.f32 %v2925_v22, %v2924_v21 }
 0x2dd   :  { %v2927_v23 = vpop.f32.mrf.mxu0 }
 0x2df   :  { %v2928_v24 = vpop.f32.mrf.mxu0 }
 0x2f9   :  { %v2955_v30 = vpop.f32.mrf.mxu0 }
 0x2fa   :  { %v2317_v31 = vpop.f32.mrf.mxu1 }
 0x2fb   :  { %v2956_v32 = vpop.f32.mrf.mxu0  ;;  %v2318_v39 = vadd.f32 %v2926_v38, %v2317_v31 }
 0x2fc   :  { %v2988_v33 = vpop.f32.mrf.mxu1  ;;  %v2957_v18 = vadd.f32 %v2956_v32, %v2955_v30 }
 0x2fd   :  { %v2958_v34 = vpop.f32.mrf.mxu0 }
 0x2fe   :  { %v2320_v35 = vpop.f32.mrf.mxu1  ;;  %v2502_v40 = vadd.f32 %v2957_v18, %v2318_v39 }
 0x2ff   :  { %v2959_v36 = vpop.f32.mrf.mxu0 }
 0x300   :  { %v2989_v37 = vpop.f32.mrf.mxu1 }
 0x31a   :  { %v2541_v52 = vpop.f32.mrf.mxu1 }
 0x31b   :  { %v2542_v42 = vadd.f32 %v2541_v52, %v2502_v40 }
 0x31c   :  { %v3008_v43 = vpop.f32.mrf.mxu1 }
 0x31d   :  { %v2554_v26 = vadd.f32 %v2819_v41, %v2542_v42 }
 0x31e   :  { %v2544_v29 = vpop.f32.mrf.mxu1 }
 0x31f   :  { %2556 = vst.msk [vmem:[%s3726_s9] sm:$0xff] %vm2555_vm3, %v2554_v26 }
 0x320   :  { %v3009_v44 = vpop.f32.mrf.mxu1 }
 0x321   :  { %2561 = vsyncpa [#allocation3], 1 }
 0x322   :  { %2562 = vsyncpa [#allocation5], 1 }

</bundles_post_ra>
